<compile_context>
chip_gen: v6e
topology: v6e:2x2x1
jax: 0.10.0
libtpu: 0.0.40
codegen_flags: <defaults>
</compile_context>

<pallas_src>
import math
from functools import partial

import jax
import jax.numpy as jnp
from jax.experimental import pallas as pl
from jax.experimental.pallas import tpu as pltpu


def _layer_norm(x, gamma, beta, eps):
    mean = jnp.mean(x, axis=-1, keepdims=True)
    var = jnp.mean(jnp.square(x - mean), axis=-1, keepdims=True)
    return (x - mean) * jax.lax.rsqrt(var + eps) * gamma + beta


def _pick_tq(seq_len):
    for t in (256, 128):
        if seq_len % t == 0:
            return t
    return seq_len


def _vmem_limit_bytes():
    # Leave headroom below physical VMEM (64 MiB v7x, 128 MiB v5e/v6e).
    try:
        cap = int(pltpu.get_tpu_info().vmem_capacity_bytes)
        return int(min(max(cap - 8 * 2**20, 16 * 2**20), 100 * 2**20))
    except Exception:
        return 56 * 2**20


def encoder_block_kernel(
    x_ref, bias_ref,
    wq_ref, wk_ref, wv_ref, wfc_ref, ln1_g_ref, ln1_b_ref,
    w1_ref, w2_ref, ln2_g_ref, ln2_b_ref,
    out_ref, attn_ref,
    ctx_ref,
    *, n_head, d_k, d_v, d_model, tq, ff_chunk,
):
    qb = pl.program_id(1)
    row0 = pl.multiple_of(qb * tq, tq)

    # Residual kept in f32; matmul operands cast to bf16 (MXU fast path).
    x_q_f32 = x_ref[0, pl.ds(row0, tq), :]            # [TQ, D]  f32
    x_q = x_q_f32.astype(jnp.bfloat16)
    x_kv = x_ref[0].astype(jnp.bfloat16)              # [S, D]   bf16 (K/V need full seq)

    # NOTE: the PyTorch ScaledDotProductAttention divides by sqrt(d_model),
    # not sqrt(d_k) -- reproduced exactly.  Scale q once (not per score tile).
    scale = 1.0 / math.sqrt(d_model)
    q = (jnp.dot(x_q, wq_ref[...], preferred_element_type=jnp.float32)
         * scale).astype(jnp.bfloat16)                                  # [TQ, H*dk]
    k = jnp.dot(x_kv, wk_ref[...],
                preferred_element_type=jnp.float32).astype(jnp.bfloat16)  # [S, H*dk]
    v = jnp.dot(x_kv, wv_ref[...],
                preferred_element_type=jnp.float32).astype(jnp.bfloat16)  # [S, H*dv]

    bias = bias_ref[0].astype(jnp.float32)             # [TQ, S] additive mask bias

    # Small static head loop; ctx slices written straight into VMEM scratch
    # (no concatenate / relayout).  Softmax kept in f32.
    for h in range(n_head):
        qh = q[:, h * d_k:(h + 1) * d_k]
        kh = k[:, h * d_k:(h + 1) * d_k]
        vh = v[:, h * d_v:(h + 1) * d_v]

        s = jax.lax.dot_general(qh, kh, (((1,), (1,)), ((), ())),
                                preferred_element_type=jnp.float32) + bias
        s = s - jnp.max(s, axis=-1, keepdims=True)
        e = jnp.exp(s)
        p = e * pl.reciprocal(jnp.sum(e, axis=-1, keepdims=True), approx=True)

        attn_ref[0, h] = p.astype(attn_ref.dtype)
        ctx_ref[:, h * d_v:(h + 1) * d_v] = jnp.dot(
            p.astype(jnp.bfloat16), vh,
            preferred_element_type=jnp.float32).astype(jnp.bfloat16)

    mha = jnp.dot(ctx_ref[...], wfc_ref[...], preferred_element_type=jnp.float32)
    # TODO(synk): dropout is stochastic -> identity (eval mode).
    h1 = _layer_norm(mha + x_q_f32, ln1_g_ref[0], ln1_b_ref[0], 1e-5)   # attn LN, eps=1e-5
    h1_bf = h1.astype(jnp.bfloat16)

    # Feed-forward, chunked over d_inner so the [TQ, d_inner] intermediate
    # never materializes whole.
    d_inner = w1_ref.shape[1]
    ff = jnp.zeros((tq, d_model), jnp.float32)
    for c in range(0, d_inner, ff_chunk):
        a = jnp.dot(h1_bf, w1_ref[:, c:c + ff_chunk],
                    preferred_element_type=jnp.float32)
        a = jnp.maximum(a, 0.0).astype(jnp.bfloat16)
        ff = ff + jnp.dot(a, w2_ref[c:c + ff_chunk, :],
                          preferred_element_type=jnp.float32)

    out_ref[0] = _layer_norm(h1 + ff, ln2_g_ref[0], ln2_b_ref[0],
                             1e-6).astype(out_ref.dtype)                # FF LN, eps=1e-6


def encoder_block(x, attn_mask, params, *, n_head, d_k, d_v, attn_dtype=jnp.float32):
    B, S, D = x.shape
    d_inner = params["w1"].shape[1]

    tq = _pick_tq(S)
    n_qb = S // tq
    ff_chunk = 512 if d_inner % 512 == 0 else d_inner

    # bf16 matmul operands (halves weight DMA + VMEM).  LN params stay f32.
    wq = params["wq"].astype(jnp.bfloat16)
    wk = params["wk"].astype(jnp.bfloat16)
    wv = params["wv"].astype(jnp.bfloat16)
    wfc = params["wfc"].astype(jnp.bfloat16)
    w1 = params["w1"].astype(jnp.bfloat16)
    w2 = params["w2"].astype(jnp.bfloat16)

    # Additive mask bias (bf16).  Equivalent to masked_fill_(-1e9) except for
    # fully-masked rows (degenerate ~uniform output in both cases).
    bias = jnp.where(attn_mask != 0, -1e9, 0.0).astype(jnp.bfloat16)

    kernel = partial(encoder_block_kernel, n_head=n_head, d_k=d_k, d_v=d_v,
                     d_model=D, tq=tq, ff_chunk=ff_chunk)

    const2d = lambda shape: pl.BlockSpec(shape, lambda b, qb: (0, 0))

    return pl.pallas_call(
        kernel,
        out_shape=(
            jax.ShapeDtypeStruct((B, S, D), x.dtype),
            jax.ShapeDtypeStruct((B, n_head, S, S), attn_dtype),
        ),
        grid_spec=pltpu.PrefetchScalarGridSpec(
            num_scalar_prefetch=0,
            grid=(B, n_qb),
            in_specs=[
                pl.BlockSpec((1, S, D), lambda b, qb: (b, 0, 0)),       # x (full seq for K/V)
                pl.BlockSpec((1, tq, S), lambda b, qb: (b, qb, 0)),     # mask bias (q tile)
                const2d((D, n_head * d_k)),                             # W_q
                const2d((D, n_head * d_k)),                             # W_k
                const2d((D, n_head * d_v)),                             # W_v
                const2d((n_head * d_v, D)),                             # fc
                const2d((1, D)),                                        # ln1 gamma
                const2d((1, D)),                                        # ln1 beta
                const2d((D, d_inner)),                                  # ff w1
                const2d((d_inner, D)),                                  # ff w2
                const2d((1, D)),                                        # ln2 gamma
                const2d((1, D)),                                        # ln2 beta
            ],
            out_specs=[
                pl.BlockSpec((1, tq, D), lambda b, qb: (b, qb, 0)),
                pl.BlockSpec((1, n_head, tq, S), lambda b, qb: (b, 0, qb, 0)),
            ],
            scratch_shapes=[pltpu.VMEM((tq, n_head * d_v), jnp.bfloat16)],
        ),
        compiler_params=pltpu.CompilerParams(
            dimension_semantics=("parallel", "parallel"),
            vmem_limit_bytes=_vmem_limit_bytes(),
        ),
    )(
        x, bias,
        wq, wk, wv, wfc,
        params["ln1_g"], params["ln1_b"],
        w1, w2,
        params["ln2_g"], params["ln2_b"],
    )


def encoder_block_ref(x, attn_mask, params, *, n_head, d_k, d_v):
    """Pure-JAX f32 reference mirroring the PyTorch forward (eval mode)."""
    B, S, D = x.shape
    q = (x @ params["wq"]).reshape(B, S, n_head, d_k).transpose(0, 2, 1, 3)
    k = (x @ params["wk"]).reshape(B, S, n_head, d_k).transpose(0, 2, 1, 3)
    v = (x @ params["wv"]).reshape(B, S, n_head, d_v).transpose(0, 2, 1, 3)
    scores = jnp.einsum("bhqd,bhkd->bhqk", q, k) / math.sqrt(D)
    scores = jnp.where(attn_mask[:, None, :, :] != 0, -1e9, scores)
    attn = jax.nn.softmax(scores, axis=-1)
    ctx = jnp.einsum("bhqk,bhkd->bhqd", attn, v).transpose(0, 2, 1, 3).reshape(B, S, n_head * d_v)
    mha = ctx @ params["wfc"]

    def ln(y, g, b, eps):
        m = jnp.mean(y, axis=-1, keepdims=True)
        vv = jnp.mean(jnp.square(y - m), axis=-1, keepdims=True)
        return (y - m) * jax.lax.rsqrt(vv + eps) * g + b

    h1 = ln(mha + x, params["ln1_g"][0], params["ln1_b"][0], 1e-5)
    ff = jnp.maximum(h1 @ params["w1"], 0.0) @ params["w2"]
    out = ln(h1 + ff, params["ln2_g"][0], params["ln2_b"][0], 1e-6)
    return out, attn


if __name__ == "__main__":
    B, S = 2, 8
    d_model, d_key, d_value, nhead, d_inner = 32, 8, 8, 4, 64

    key = jax.random.PRNGKey(0)
    ks = jax.random.split(key, 8)

    params = {
        "wq": 0.05 * jax.random.normal(ks[0], (d_model, nhead * d_key), jnp.float32),
        "wk": 0.05 * jax.random.normal(ks[1], (d_model, nhead * d_key), jnp.float32),
        "wv": 0.05 * jax.random.normal(ks[2], (d_model, nhead * d_value), jnp.float32),
        "wfc": 0.05 * jax.random.normal(ks[3], (nhead * d_value, d_model), jnp.float32),
        "ln1_g": jnp.ones((1, d_model), jnp.float32),
        "ln1_b": jnp.zeros((1, d_model), jnp.float32),
        "w1": 0.05 * jax.random.normal(ks[4], (d_model, d_inner), jnp.float32),
        "w2": 0.05 * jax.random.normal(ks[5], (d_inner, d_model), jnp.float32),
        "ln2_g": jnp.ones((1, d_model), jnp.float32),
        "ln2_b": jnp.zeros((1, d_model), jnp.float32),
    }

    x = jax.random.normal(ks[6], (B, S, d_model), jnp.float32)
    # Pad-like mask: mask out the last 2 key positions of batch element 1.
    mask = jnp.zeros((B, S, S), jnp.int32).at[1, :, -2:].set(1)

    out, attn = encoder_block(x, mask, params, n_head=nhead, d_k=d_key, d_v=d_value)
    jax.block_until_ready((out, attn))

    out_ref, attn_ref_ = encoder_block_ref(x, mask, params, n_head=nhead, d_k=d_key, d_v=d_value)
    # bf16 MXU operands in the kernel vs f32 reference -> slightly loose tolerance.
    assert jnp.allclose(out, out_ref, atol=2e-2, rtol=2e-2), "output mismatch"
    assert jnp.allclose(attn, attn_ref_, atol=2e-2, rtol=2e-2), "attn mismatch"

    print("KERNEL_OK")
</pallas_src>

<mosaic_0001>
module attributes {stable_mosaic.version = 11 : i64} {
  func.func @encoder_block_kernel(%arg0: i32, %arg1: i32, %arg2: memref<1x8x32xf32, #tpu.memory_space<vmem>>, %arg3: memref<1x8x8xbf16, #tpu.memory_space<vmem>>, %arg4: memref<32x32xbf16, #tpu.memory_space<vmem>>, %arg5: memref<32x32xbf16, #tpu.memory_space<vmem>>, %arg6: memref<32x32xbf16, #tpu.memory_space<vmem>>, %arg7: memref<32x32xbf16, #tpu.memory_space<vmem>>, %arg8: memref<1x32xf32, #tpu.memory_space<vmem>>, %arg9: memref<1x32xf32, #tpu.memory_space<vmem>>, %arg10: memref<32x64xbf16, #tpu.memory_space<vmem>>, %arg11: memref<64x32xbf16, #tpu.memory_space<vmem>>, %arg12: memref<1x32xf32, #tpu.memory_space<vmem>>, %arg13: memref<1x32xf32, #tpu.memory_space<vmem>>, %arg14: memref<1x8x32xf32, #tpu.memory_space<vmem>>, %arg15: memref<1x4x8x8xf32, #tpu.memory_space<vmem>>, %arg16: memref<8x32xbf16, #tpu.memory_space<vmem>>) attributes {dimension_semantics = [#tpu.dimension_semantics<parallel>, #tpu.dimension_semantics<parallel>], iteration_bounds = array<i64: 2, 1>, scalar_prefetch = 0 : i64, scratch_operands = 1 : i64, tpu.core_type = #tpu.core_type<tc>, window_params = [{transform_indices = @transform_0, window_bounds = array<i64: 1, 8, 32>}, {transform_indices = @transform_1, window_bounds = array<i64: 1, 8, 8>}, {pipeline_mode = #tpu.pipeline_mode<synchronous>, transform_indices = @transform_2, window_bounds = array<i64: 32, 32>}, {pipeline_mode = #tpu.pipeline_mode<synchronous>, transform_indices = @transform_3, window_bounds = array<i64: 32, 32>}, {pipeline_mode = #tpu.pipeline_mode<synchronous>, transform_indices = @transform_4, window_bounds = array<i64: 32, 32>}, {pipeline_mode = #tpu.pipeline_mode<synchronous>, transform_indices = @transform_5, window_bounds = array<i64: 32, 32>}, {pipeline_mode = #tpu.pipeline_mode<synchronous>, transform_indices = @transform_6, window_bounds = array<i64: 1, 32>}, {pipeline_mode = #tpu.pipeline_mode<synchronous>, transform_indices = @transform_7, window_bounds = array<i64: 1, 32>}, {pipeline_mode = #tpu.pipeline_mode<synchronous>, transform_indices = @transform_8, window_bounds = array<i64: 32, 64>}, {pipeline_mode = #tpu.pipeline_mode<synchronous>, transform_indices = @transform_9, window_bounds = array<i64: 64, 32>}, {pipeline_mode = #tpu.pipeline_mode<synchronous>, transform_indices = @transform_10, window_bounds = array<i64: 1, 32>}, {pipeline_mode = #tpu.pipeline_mode<synchronous>, transform_indices = @transform_11, window_bounds = array<i64: 1, 32>}, {transform_indices = @transform_12, window_bounds = array<i64: 1, 8, 32>}, {transform_indices = @transform_13, window_bounds = array<i64: 1, 4, 8, 8>}]} {
    %c8_i32 = arith.constant 8 : i32
    %0 = arith.muli %arg1, %c8_i32 : i32
    %1 = tpu.assume_multiple %0, 8 : i32
    %c0 = arith.constant 0 : index
    %2 = arith.index_cast %1 : i32 to index
    %c0_0 = arith.constant 0 : index
    %3 = vector.load %arg2[%c0, %2, %c0_0] : memref<1x8x32xf32, #tpu.memory_space<vmem>>, vector<1x8x32xf32>
    %4 = vector.shape_cast %3 : vector<1x8x32xf32> to vector<8x32xf32>
    %5 = arith.truncf %4 : vector<8x32xf32> to vector<8x32xbf16>
    %c0_1 = arith.constant 0 : index
    %c0_2 = arith.constant 0 : index
    %c0_3 = arith.constant 0 : index
    %6 = vector.load %arg2[%c0_1, %c0_2, %c0_3] : memref<1x8x32xf32, #tpu.memory_space<vmem>>, vector<1x8x32xf32>
    %7 = vector.shape_cast %6 : vector<1x8x32xf32> to vector<8x32xf32>
    %8 = arith.truncf %7 : vector<8x32xf32> to vector<8x32xbf16>
    %c0_4 = arith.constant 0 : index
    %c0_5 = arith.constant 0 : index
    %9 = vector.load %arg4[%c0_4, %c0_5] : memref<32x32xbf16, #tpu.memory_space<vmem>>, vector<32x32xbf16>
    %cst = arith.constant dense<0.000000e+00> : vector<8x32xf32>
    %10 = tpu.matmul %5, %9, %cst {dimension_numbers = #tpu.dot_dimension_numbers<[1], [0], [0], [1], [0, 0, 1, 1], [], []>} : vector<8x32xbf16>, vector<32x32xbf16>, vector<8x32xf32> -> vector<8x32xf32>
    %cst_6 = arith.constant 0.176776692 : f32
    %11 = vector.broadcast %cst_6 : f32 to vector<8x32xf32>
    %12 = arith.mulf %10, %11 : vector<8x32xf32>
    %13 = arith.truncf %12 : vector<8x32xf32> to vector<8x32xbf16>
    %c0_7 = arith.constant 0 : index
    %c0_8 = arith.constant 0 : index
    %14 = vector.load %arg5[%c0_7, %c0_8] : memref<32x32xbf16, #tpu.memory_space<vmem>>, vector<32x32xbf16>
    %cst_9 = arith.constant dense<0.000000e+00> : vector<8x32xf32>
    %15 = tpu.matmul %8, %14, %cst_9 {dimension_numbers = #tpu.dot_dimension_numbers<[1], [0], [0], [1], [0, 0, 1, 1], [], []>} : vector<8x32xbf16>, vector<32x32xbf16>, vector<8x32xf32> -> vector<8x32xf32>
    %16 = arith.truncf %15 : vector<8x32xf32> to vector<8x32xbf16>
    %c0_10 = arith.constant 0 : index
    %c0_11 = arith.constant 0 : index
    %17 = vector.load %arg6[%c0_10, %c0_11] : memref<32x32xbf16, #tpu.memory_space<vmem>>, vector<32x32xbf16>
    %cst_12 = arith.constant dense<0.000000e+00> : vector<8x32xf32>
    %18 = tpu.matmul %8, %17, %cst_12 {dimension_numbers = #tpu.dot_dimension_numbers<[1], [0], [0], [1], [0, 0, 1, 1], [], []>} : vector<8x32xbf16>, vector<32x32xbf16>, vector<8x32xf32> -> vector<8x32xf32>
    %19 = arith.truncf %18 : vector<8x32xf32> to vector<8x32xbf16>
    %c0_13 = arith.constant 0 : index
    %c0_14 = arith.constant 0 : index
    %c0_15 = arith.constant 0 : index
    %20 = vector.load %arg3[%c0_13, %c0_14, %c0_15] : memref<1x8x8xbf16, #tpu.memory_space<vmem>>, vector<1x8x8xbf16>
    %21 = vector.shape_cast %20 : vector<1x8x8xbf16> to vector<8x8xbf16>
    %22 = arith.extf %21 : vector<8x8xbf16> to vector<8x8xf32>
    %23 = vector.extract_strided_slice %13 {offsets = [0, 0], sizes = [8, 8], strides = [1, 1]} : vector<8x32xbf16> to vector<8x8xbf16>
    %24 = vector.extract_strided_slice %16 {offsets = [0, 0], sizes = [8, 8], strides = [1, 1]} : vector<8x32xbf16> to vector<8x8xbf16>
    %25 = vector.extract_strided_slice %19 {offsets = [0, 0], sizes = [8, 8], strides = [1, 1]} : vector<8x32xbf16> to vector<8x8xbf16>
    %cst_16 = arith.constant dense<0.000000e+00> : vector<8x8xf32>
    %26 = tpu.matmul %23, %24, %cst_16 {dimension_numbers = #tpu.dot_dimension_numbers<[1], [1], [0], [0], [0, 0, 1, 0], [], []>} : vector<8x8xbf16>, vector<8x8xbf16>, vector<8x8xf32> -> vector<8x8xf32>
    %27 = arith.addf %26, %22 : vector<8x8xf32>
    %cst_17 = arith.constant dense<0xFF800000> : vector<8xf32>
    %28 = vector.multi_reduction <maximumf>, %27, %cst_17 [1] : vector<8x8xf32> to vector<8xf32>
    %29 = vector.shape_cast %28 : vector<8xf32> to vector<8x1xf32>
    %30 = vector.broadcast %29 : vector<8x1xf32> to vector<8x8xf32>
    %31 = arith.subf %27, %30 : vector<8x8xf32>
    %32 = math.exp %31 : vector<8x8xf32>
    %cst_18 = arith.constant dense<0.000000e+00> : vector<8xf32>
    %33 = vector.multi_reduction <add>, %32, %cst_18 [1] : vector<8x8xf32> to vector<8xf32>
    %34 = vector.shape_cast %33 : vector<8xf32> to vector<8x1xf32>
    %35 = tpu.reciprocal %34 {approx = true} : vector<8x1xf32> -> vector<8x1xf32>
    %36 = vector.broadcast %35 : vector<8x1xf32> to vector<8x8xf32>
    %37 = arith.mulf %32, %36 : vector<8x8xf32>
    %c0_19 = arith.constant 0 : index
    %c0_20 = arith.constant 0 : index
    %c0_21 = arith.constant 0 : index
    %c0_22 = arith.constant 0 : index
    %38 = vector.load %arg15[%c0_19, %c0_20, %c0_21, %c0_22] : memref<1x4x8x8xf32, #tpu.memory_space<vmem>>, vector<1x1x8x8xf32>
    %39 = vector.shape_cast %38 : vector<1x1x8x8xf32> to vector<8x8xf32>
    %40 = vector.shape_cast %37 : vector<8x8xf32> to vector<1x1x8x8xf32>
    tpu.vector_store %arg15[%c0_19, %c0_20, %c0_21, %c0_22], %40 {strides = array<i32>} : memref<1x4x8x8xf32, #tpu.memory_space<vmem>>, vector<1x1x8x8xf32>,
    %41 = arith.truncf %37 : vector<8x8xf32> to vector<8x8xbf16>
    %cst_23 = arith.constant dense<0.000000e+00> : vector<8x8xf32>
    %42 = tpu.matmul %41, %25, %cst_23 {dimension_numbers = #tpu.dot_dimension_numbers<[1], [0], [0], [1], [0, 0, 1, 1], [], []>} : vector<8x8xbf16>, vector<8x8xbf16>, vector<8x8xf32> -> vector<8x8xf32>
    %43 = arith.truncf %42 : vector<8x8xf32> to vector<8x8xbf16>
    %c0_24 = arith.constant 0 : index
    %c0_25 = arith.constant 0 : index
    %44 = vector.load %arg16[%c0_24, %c0_25] : memref<8x32xbf16, #tpu.memory_space<vmem>>, vector<8x8xbf16>
    tpu.vector_store %arg16[%c0_24, %c0_25], %43 {strides = array<i32>} : memref<8x32xbf16, #tpu.memory_space<vmem>>, vector<8x8xbf16>,
    %45 = vector.extract_strided_slice %13 {offsets = [0, 8], sizes = [8, 8], strides = [1, 1]} : vector<8x32xbf16> to vector<8x8xbf16>
    %46 = vector.extract_strided_slice %16 {offsets = [0, 8], sizes = [8, 8], strides = [1, 1]} : vector<8x32xbf16> to vector<8x8xbf16>
    %47 = vector.extract_strided_slice %19 {offsets = [0, 8], sizes = [8, 8], strides = [1, 1]} : vector<8x32xbf16> to vector<8x8xbf16>
    %cst_26 = arith.constant dense<0.000000e+00> : vector<8x8xf32>
    %48 = tpu.matmul %45, %46, %cst_26 {dimension_numbers = #tpu.dot_dimension_numbers<[1], [1], [0], [0], [0, 0, 1, 0], [], []>} : vector<8x8xbf16>, vector<8x8xbf16>, vector<8x8xf32> -> vector<8x8xf32>
    %49 = arith.addf %48, %22 : vector<8x8xf32>
    %cst_27 = arith.constant dense<0xFF800000> : vector<8xf32>
    %50 = vector.multi_reduction <maximumf>, %49, %cst_27 [1] : vector<8x8xf32> to vector<8xf32>
    %51 = vector.shape_cast %50 : vector<8xf32> to vector<8x1xf32>
    %52 = vector.broadcast %51 : vector<8x1xf32> to vector<8x8xf32>
    %53 = arith.subf %49, %52 : vector<8x8xf32>
    %54 = math.exp %53 : vector<8x8xf32>
    %cst_28 = arith.constant dense<0.000000e+00> : vector<8xf32>
    %55 = vector.multi_reduction <add>, %54, %cst_28 [1] : vector<8x8xf32> to vector<8xf32>
    %56 = vector.shape_cast %55 : vector<8xf32> to vector<8x1xf32>
    %57 = tpu.reciprocal %56 {approx = true} : vector<8x1xf32> -> vector<8x1xf32>
    %58 = vector.broadcast %57 : vector<8x1xf32> to vector<8x8xf32>
    %59 = arith.mulf %54, %58 : vector<8x8xf32>
    %c0_29 = arith.constant 0 : index
    %c1 = arith.constant 1 : index
    %c0_30 = arith.constant 0 : index
    %c0_31 = arith.constant 0 : index
    %60 = vector.load %arg15[%c0_29, %c1, %c0_30, %c0_31] : memref<1x4x8x8xf32, #tpu.memory_space<vmem>>, vector<1x1x8x8xf32>
    %61 = vector.shape_cast %60 : vector<1x1x8x8xf32> to vector<8x8xf32>
    %62 = vector.shape_cast %59 : vector<8x8xf32> to vector<1x1x8x8xf32>
    tpu.vector_store %arg15[%c0_29, %c1, %c0_30, %c0_31], %62 {strides = array<i32>} : memref<1x4x8x8xf32, #tpu.memory_space<vmem>>, vector<1x1x8x8xf32>,
    %63 = arith.truncf %59 : vector<8x8xf32> to vector<8x8xbf16>
    %cst_32 = arith.constant dense<0.000000e+00> : vector<8x8xf32>
    %64 = tpu.matmul %63, %47, %cst_32 {dimension_numbers = #tpu.dot_dimension_numbers<[1], [0], [0], [1], [0, 0, 1, 1], [], []>} : vector<8x8xbf16>, vector<8x8xbf16>, vector<8x8xf32> -> vector<8x8xf32>
    %65 = arith.truncf %64 : vector<8x8xf32> to vector<8x8xbf16>
    %c0_33 = arith.constant 0 : index
    %c8 = arith.constant 8 : index
    %66 = vector.load %arg16[%c0_33, %c8] : memref<8x32xbf16, #tpu.memory_space<vmem>>, vector<8x8xbf16>
    tpu.vector_store %arg16[%c0_33, %c8], %65 {strides = array<i32>} : memref<8x32xbf16, #tpu.memory_space<vmem>>, vector<8x8xbf16>,
    %67 = vector.extract_strided_slice %13 {offsets = [0, 16], sizes = [8, 8], strides = [1, 1]} : vector<8x32xbf16> to vector<8x8xbf16>
    %68 = vector.extract_strided_slice %16 {offsets = [0, 16], sizes = [8, 8], strides = [1, 1]} : vector<8x32xbf16> to vector<8x8xbf16>
    %69 = vector.extract_strided_slice %19 {offsets = [0, 16], sizes = [8, 8], strides = [1, 1]} : vector<8x32xbf16> to vector<8x8xbf16>
    %cst_34 = arith.constant dense<0.000000e+00> : vector<8x8xf32>
    %70 = tpu.matmul %67, %68, %cst_34 {dimension_numbers = #tpu.dot_dimension_numbers<[1], [1], [0], [0], [0, 0, 1, 0], [], []>} : vector<8x8xbf16>, vector<8x8xbf16>, vector<8x8xf32> -> vector<8x8xf32>
    %71 = arith.addf %70, %22 : vector<8x8xf32>
    %cst_35 = arith.constant dense<0xFF800000> : vector<8xf32>
    %72 = vector.multi_reduction <maximumf>, %71, %cst_35 [1] : vector<8x8xf32> to vector<8xf32>
    %73 = vector.shape_cast %72 : vector<8xf32> to vector<8x1xf32>
    %74 = vector.broadcast %73 : vector<8x1xf32> to vector<8x8xf32>
    %75 = arith.subf %71, %74 : vector<8x8xf32>
    %76 = math.exp %75 : vector<8x8xf32>
    %cst_36 = arith.constant dense<0.000000e+00> : vector<8xf32>
    %77 = vector.multi_reduction <add>, %76, %cst_36 [1] : vector<8x8xf32> to vector<8xf32>
    %78 = vector.shape_cast %77 : vector<8xf32> to vector<8x1xf32>
    %79 = tpu.reciprocal %78 {approx = true} : vector<8x1xf32> -> vector<8x1xf32>
    %80 = vector.broadcast %79 : vector<8x1xf32> to vector<8x8xf32>
    %81 = arith.mulf %76, %80 : vector<8x8xf32>
    %c0_37 = arith.constant 0 : index
    %c2 = arith.constant 2 : index
    %c0_38 = arith.constant 0 : index
    %c0_39 = arith.constant 0 : index
    %82 = vector.load %arg15[%c0_37, %c2, %c0_38, %c0_39] : memref<1x4x8x8xf32, #tpu.memory_space<vmem>>, vector<1x1x8x8xf32>
    %83 = vector.shape_cast %82 : vector<1x1x8x8xf32> to vector<8x8xf32>
    %84 = vector.shape_cast %81 : vector<8x8xf32> to vector<1x1x8x8xf32>
    tpu.vector_store %arg15[%c0_37, %c2, %c0_38, %c0_39], %84 {strides = array<i32>} : memref<1x4x8x8xf32, #tpu.memory_space<vmem>>, vector<1x1x8x8xf32>,
    %85 = arith.truncf %81 : vector<8x8xf32> to vector<8x8xbf16>
    %cst_40 = arith.constant dense<0.000000e+00> : vector<8x8xf32>
    %86 = tpu.matmul %85, %69, %cst_40 {dimension_numbers = #tpu.dot_dimension_numbers<[1], [0], [0], [1], [0, 0, 1, 1], [], []>} : vector<8x8xbf16>, vector<8x8xbf16>, vector<8x8xf32> -> vector<8x8xf32>
    %87 = arith.truncf %86 : vector<8x8xf32> to vector<8x8xbf16>
    %c0_41 = arith.constant 0 : index
    %c16 = arith.constant 16 : index
    %88 = vector.load %arg16[%c0_41, %c16] : memref<8x32xbf16, #tpu.memory_space<vmem>>, vector<8x8xbf16>
    tpu.vector_store %arg16[%c0_41, %c16], %87 {strides = array<i32>} : memref<8x32xbf16, #tpu.memory_space<vmem>>, vector<8x8xbf16>,
    %89 = vector.extract_strided_slice %13 {offsets = [0, 24], sizes = [8, 8], strides = [1, 1]} : vector<8x32xbf16> to vector<8x8xbf16>
    %90 = vector.extract_strided_slice %16 {offsets = [0, 24], sizes = [8, 8], strides = [1, 1]} : vector<8x32xbf16> to vector<8x8xbf16>
    %91 = vector.extract_strided_slice %19 {offsets = [0, 24], sizes = [8, 8], strides = [1, 1]} : vector<8x32xbf16> to vector<8x8xbf16>
    %cst_42 = arith.constant dense<0.000000e+00> : vector<8x8xf32>
    %92 = tpu.matmul %89, %90, %cst_42 {dimension_numbers = #tpu.dot_dimension_numbers<[1], [1], [0], [0], [0, 0, 1, 0], [], []>} : vector<8x8xbf16>, vector<8x8xbf16>, vector<8x8xf32> -> vector<8x8xf32>
    %93 = arith.addf %92, %22 : vector<8x8xf32>
    %cst_43 = arith.constant dense<0xFF800000> : vector<8xf32>
    %94 = vector.multi_reduction <maximumf>, %93, %cst_43 [1] : vector<8x8xf32> to vector<8xf32>
    %95 = vector.shape_cast %94 : vector<8xf32> to vector<8x1xf32>
    %96 = vector.broadcast %95 : vector<8x1xf32> to vector<8x8xf32>
    %97 = arith.subf %93, %96 : vector<8x8xf32>
    %98 = math.exp %97 : vector<8x8xf32>
    %cst_44 = arith.constant dense<0.000000e+00> : vector<8xf32>
    %99 = vector.multi_reduction <add>, %98, %cst_44 [1] : vector<8x8xf32> to vector<8xf32>
    %100 = vector.shape_cast %99 : vector<8xf32> to vector<8x1xf32>
    %101 = tpu.reciprocal %100 {approx = true} : vector<8x1xf32> -> vector<8x1xf32>
    %102 = vector.broadcast %101 : vector<8x1xf32> to vector<8x8xf32>
    %103 = arith.mulf %98, %102 : vector<8x8xf32>
    %c0_45 = arith.constant 0 : index
    %c3 = arith.constant 3 : index
    %c0_46 = arith.constant 0 : index
    %c0_47 = arith.constant 0 : index
    %104 = vector.load %arg15[%c0_45, %c3, %c0_46, %c0_47] : memref<1x4x8x8xf32, #tpu.memory_space<vmem>>, vector<1x1x8x8xf32>
    %105 = vector.shape_cast %104 : vector<1x1x8x8xf32> to vector<8x8xf32>
    %106 = vector.shape_cast %103 : vector<8x8xf32> to vector<1x1x8x8xf32>
    tpu.vector_store %arg15[%c0_45, %c3, %c0_46, %c0_47], %106 {strides = array<i32>} : memref<1x4x8x8xf32, #tpu.memory_space<vmem>>, vector<1x1x8x8xf32>,
    %107 = arith.truncf %103 : vector<8x8xf32> to vector<8x8xbf16>
    %cst_48 = arith.constant dense<0.000000e+00> : vector<8x8xf32>
    %108 = tpu.matmul %107, %91, %cst_48 {dimension_numbers = #tpu.dot_dimension_numbers<[1], [0], [0], [1], [0, 0, 1, 1], [], []>} : vector<8x8xbf16>, vector<8x8xbf16>, vector<8x8xf32> -> vector<8x8xf32>
    %109 = arith.truncf %108 : vector<8x8xf32> to vector<8x8xbf16>
    %c0_49 = arith.constant 0 : index
    %c24 = arith.constant 24 : index
    %110 = vector.load %arg16[%c0_49, %c24] : memref<8x32xbf16, #tpu.memory_space<vmem>>, vector<8x8xbf16>
    tpu.vector_store %arg16[%c0_49, %c24], %109 {strides = array<i32>} : memref<8x32xbf16, #tpu.memory_space<vmem>>, vector<8x8xbf16>,
    %c0_50 = arith.constant 0 : index
    %c0_51 = arith.constant 0 : index
    %111 = vector.load %arg16[%c0_50, %c0_51] : memref<8x32xbf16, #tpu.memory_space<vmem>>, vector<8x32xbf16>
    %c0_52 = arith.constant 0 : index
    %c0_53 = arith.constant 0 : index
    %112 = vector.load %arg7[%c0_52, %c0_53] : memref<32x32xbf16, #tpu.memory_space<vmem>>, vector<32x32xbf16>
    %cst_54 = arith.constant dense<0.000000e+00> : vector<8x32xf32>
    %113 = tpu.matmul %111, %112, %cst_54 {dimension_numbers = #tpu.dot_dimension_numbers<[1], [0], [0], [1], [0, 0, 1, 1], [], []>} : vector<8x32xbf16>, vector<32x32xbf16>, vector<8x32xf32> -> vector<8x32xf32>
    %114 = arith.addf %113, %4 : vector<8x32xf32>
    %c0_55 = arith.constant 0 : index
    %c0_56 = arith.constant 0 : index
    %115 = vector.load %arg8[%c0_55, %c0_56] : memref<1x32xf32, #tpu.memory_space<vmem>>, vector<1x32xf32>
    %116 = vector.shape_cast %115 : vector<1x32xf32> to vector<32xf32>
    %c0_57 = arith.constant 0 : index
    %c0_58 = arith.constant 0 : index
    %117 = vector.load %arg9[%c0_57, %c0_58] : memref<1x32xf32, #tpu.memory_space<vmem>>, vector<1x32xf32>
    %118 = vector.shape_cast %117 : vector<1x32xf32> to vector<32xf32>
    %cst_59 = arith.constant dense<0.000000e+00> : vector<8xf32>
    %119 = vector.multi_reduction <add>, %114, %cst_59 [1] : vector<8x32xf32> to vector<8xf32>
    %120 = vector.shape_cast %119 : vector<8xf32> to vector<8x1xf32>
    %cst_60 = arith.constant 3.200000e+01 : f32
    %121 = vector.broadcast %cst_60 : f32 to vector<8x1xf32>
    %122 = arith.divf %120, %121 : vector<8x1xf32>
    %123 = vector.broadcast %122 : vector<8x1xf32> to vector<8x32xf32>
    %124 = arith.subf %114, %123 : vector<8x32xf32>
    %125 = arith.mulf %124, %124 : vector<8x32xf32>
    %cst_61 = arith.constant dense<0.000000e+00> : vector<8xf32>
    %126 = vector.multi_reduction <add>, %125, %cst_61 [1] : vector<8x32xf32> to vector<8xf32>
    %127 = vector.shape_cast %126 : vector<8xf32> to vector<8x1xf32>
    %cst_62 = arith.constant 3.200000e+01 : f32
    %128 = vector.broadcast %cst_62 : f32 to vector<8x1xf32>
    %129 = arith.divf %127, %128 : vector<8x1xf32>
    %130 = vector.broadcast %122 : vector<8x1xf32> to vector<8x32xf32>
    %131 = arith.subf %114, %130 : vector<8x32xf32>
    %cst_63 = arith.constant 9.99999974E-6 : f32
    %132 = vector.broadcast %cst_63 : f32 to vector<8x1xf32>
    %133 = arith.addf %129, %132 : vector<8x1xf32>
    %134 = math.rsqrt %133 : vector<8x1xf32>
    %135 = vector.broadcast %134 : vector<8x1xf32> to vector<8x32xf32>
    %136 = arith.mulf %131, %135 : vector<8x32xf32>
    %137 = vector.shape_cast %116 : vector<32xf32> to vector<1x32xf32>
    %138 = vector.broadcast %137 : vector<1x32xf32> to vector<8x32xf32>
    %139 = arith.mulf %136, %138 : vector<8x32xf32>
    %140 = vector.shape_cast %118 : vector<32xf32> to vector<1x32xf32>
    %141 = vector.broadcast %140 : vector<1x32xf32> to vector<8x32xf32>
    %142 = arith.addf %139, %141 : vector<8x32xf32>
    %143 = arith.truncf %142 : vector<8x32xf32> to vector<8x32xbf16>
    %cst_64 = arith.constant 0.000000e+00 : f32
    %144 = vector.broadcast %cst_64 : f32 to vector<8x32xf32>
    %c0_65 = arith.constant 0 : index
    %c0_66 = arith.constant 0 : index
    %145 = vector.load %arg10[%c0_65, %c0_66] : memref<32x64xbf16, #tpu.memory_space<vmem>>, vector<32x64xbf16>
    %cst_67 = arith.constant dense<0.000000e+00> : vector<8x64xf32>
    %146 = tpu.matmul %143, %145, %cst_67 {dimension_numbers = #tpu.dot_dimension_numbers<[1], [0], [0], [1], [0, 0, 1, 1], [], []>} : vector<8x32xbf16>, vector<32x64xbf16>, vector<8x64xf32> -> vector<8x64xf32>
    %cst_68 = arith.constant 0.000000e+00 : f32
    %147 = vector.broadcast %cst_68 : f32 to vector<8x64xf32>
    %148 = arith.maximumf %146, %147 : vector<8x64xf32>
    %149 = arith.truncf %148 : vector<8x64xf32> to vector<8x64xbf16>
    %c0_69 = arith.constant 0 : index
    %c0_70 = arith.constant 0 : index
    %150 = vector.load %arg11[%c0_69, %c0_70] : memref<64x32xbf16, #tpu.memory_space<vmem>>, vector<64x32xbf16>
    %cst_71 = arith.constant dense<0.000000e+00> : vector<8x32xf32>
    %151 = tpu.matmul %149, %150, %cst_71 {dimension_numbers = #tpu.dot_dimension_numbers<[1], [0], [0], [1], [0, 0, 1, 1], [], []>} : vector<8x64xbf16>, vector<64x32xbf16>, vector<8x32xf32> -> vector<8x32xf32>
    %152 = arith.addf %144, %151 : vector<8x32xf32>
    %153 = arith.addf %142, %152 : vector<8x32xf32>
    %c0_72 = arith.constant 0 : index
    %c0_73 = arith.constant 0 : index
    %154 = vector.load %arg12[%c0_72, %c0_73] : memref<1x32xf32, #tpu.memory_space<vmem>>, vector<1x32xf32>
    %155 = vector.shape_cast %154 : vector<1x32xf32> to vector<32xf32>
    %c0_74 = arith.constant 0 : index
    %c0_75 = arith.constant 0 : index
    %156 = vector.load %arg13[%c0_74, %c0_75] : memref<1x32xf32, #tpu.memory_space<vmem>>, vector<1x32xf32>
    %157 = vector.shape_cast %156 : vector<1x32xf32> to vector<32xf32>
    %cst_76 = arith.constant dense<0.000000e+00> : vector<8xf32>
    %158 = vector.multi_reduction <add>, %153, %cst_76 [1] : vector<8x32xf32> to vector<8xf32>
    %159 = vector.shape_cast %158 : vector<8xf32> to vector<8x1xf32>
    %cst_77 = arith.constant 3.200000e+01 : f32
    %160 = vector.broadcast %cst_77 : f32 to vector<8x1xf32>
    %161 = arith.divf %159, %160 : vector<8x1xf32>
    %162 = vector.broadcast %161 : vector<8x1xf32> to vector<8x32xf32>
    %163 = arith.subf %153, %162 : vector<8x32xf32>
    %164 = arith.mulf %163, %163 : vector<8x32xf32>
    %cst_78 = arith.constant dense<0.000000e+00> : vector<8xf32>
    %165 = vector.multi_reduction <add>, %164, %cst_78 [1] : vector<8x32xf32> to vector<8xf32>
    %166 = vector.shape_cast %165 : vector<8xf32> to vector<8x1xf32>
    %cst_79 = arith.constant 3.200000e+01 : f32
    %167 = vector.broadcast %cst_79 : f32 to vector<8x1xf32>
    %168 = arith.divf %166, %167 : vector<8x1xf32>
    %169 = vector.broadcast %161 : vector<8x1xf32> to vector<8x32xf32>
    %170 = arith.subf %153, %169 : vector<8x32xf32>
    %cst_80 = arith.constant 9.99999997E-7 : f32
    %171 = vector.broadcast %cst_80 : f32 to vector<8x1xf32>
    %172 = arith.addf %168, %171 : vector<8x1xf32>
    %173 = math.rsqrt %172 : vector<8x1xf32>
    %174 = vector.broadcast %173 : vector<8x1xf32> to vector<8x32xf32>
    %175 = arith.mulf %170, %174 : vector<8x32xf32>
    %176 = vector.shape_cast %155 : vector<32xf32> to vector<1x32xf32>
    %177 = vector.broadcast %176 : vector<1x32xf32> to vector<8x32xf32>
    %178 = arith.mulf %175, %177 : vector<8x32xf32>
    %179 = vector.shape_cast %157 : vector<32xf32> to vector<1x32xf32>
    %180 = vector.broadcast %179 : vector<1x32xf32> to vector<8x32xf32>
    %181 = arith.addf %178, %180 : vector<8x32xf32>
    %c0_81 = arith.constant 0 : index
    %c0_82 = arith.constant 0 : index
    %c0_83 = arith.constant 0 : index
    %182 = vector.load %arg14[%c0_81, %c0_82, %c0_83] : memref<1x8x32xf32, #tpu.memory_space<vmem>>, vector<1x8x32xf32>
    %183 = vector.shape_cast %182 : vector<1x8x32xf32> to vector<8x32xf32>
    %184 = vector.shape_cast %181 : vector<8x32xf32> to vector<1x8x32xf32>
    tpu.vector_store %arg14[%c0_81, %c0_82, %c0_83], %184 {strides = array<i32>} : memref<1x8x32xf32, #tpu.memory_space<vmem>>, vector<1x8x32xf32>,
    return
  }
  func.func @transform_0(%arg0: i32, %arg1: i32) -> (i32, i32, i32) {
    %c0_i32 = arith.constant 0 : i32
    %c0_i32_0 = arith.constant 0 : i32
    %c0_i32_1 = arith.constant 0 : i32
    return %arg0, %c0_i32, %c0_i32_0 : i32, i32, i32
  }
  func.func @transform_1(%arg0: i32, %arg1: i32) -> (i32, i32, i32) {
    %c0_i32 = arith.constant 0 : i32
    %c0_i32_0 = arith.constant 0 : i32
    return %arg0, %arg1, %c0_i32 : i32, i32, i32
  }
  func.func @transform_2(%arg0: i32, %arg1: i32) -> (i32, i32) {
    %c0_i32 = arith.constant 0 : i32
    %c0_i32_0 = arith.constant 0 : i32
    %c0_i32_1 = arith.constant 0 : i32
    return %c0_i32, %c0_i32_0 : i32, i32
  }
  func.func @transform_3(%arg0: i32, %arg1: i32) -> (i32, i32) {
    %c0_i32 = arith.constant 0 : i32
    %c0_i32_0 = arith.constant 0 : i32
    %c0_i32_1 = arith.constant 0 : i32
    return %c0_i32, %c0_i32_0 : i32, i32
  }
  func.func @transform_4(%arg0: i32, %arg1: i32) -> (i32, i32) {
    %c0_i32 = arith.constant 0 : i32
    %c0_i32_0 = arith.constant 0 : i32
    %c0_i32_1 = arith.constant 0 : i32
    return %c0_i32, %c0_i32_0 : i32, i32
  }
  func.func @transform_5(%arg0: i32, %arg1: i32) -> (i32, i32) {
    %c0_i32 = arith.constant 0 : i32
    %c0_i32_0 = arith.constant 0 : i32
    %c0_i32_1 = arith.constant 0 : i32
    return %c0_i32, %c0_i32_0 : i32, i32
  }
  func.func @transform_6(%arg0: i32, %arg1: i32) -> (i32, i32) {
    %c0_i32 = arith.constant 0 : i32
    %c0_i32_0 = arith.constant 0 : i32
    %c0_i32_1 = arith.constant 0 : i32
    return %c0_i32, %c0_i32_0 : i32, i32
  }
  func.func @transform_7(%arg0: i32, %arg1: i32) -> (i32, i32) {
    %c0_i32 = arith.constant 0 : i32
    %c0_i32_0 = arith.constant 0 : i32
    %c0_i32_1 = arith.constant 0 : i32
    return %c0_i32, %c0_i32_0 : i32, i32
  }
  func.func @transform_8(%arg0: i32, %arg1: i32) -> (i32, i32) {
    %c0_i32 = arith.constant 0 : i32
    %c0_i32_0 = arith.constant 0 : i32
    %c0_i32_1 = arith.constant 0 : i32
    return %c0_i32, %c0_i32_0 : i32, i32
  }
  func.func @transform_9(%arg0: i32, %arg1: i32) -> (i32, i32) {
    %c0_i32 = arith.constant 0 : i32
    %c0_i32_0 = arith.constant 0 : i32
    %c0_i32_1 = arith.constant 0 : i32
    return %c0_i32, %c0_i32_0 : i32, i32
  }
  func.func @transform_10(%arg0: i32, %arg1: i32) -> (i32, i32) {
    %c0_i32 = arith.constant 0 : i32
    %c0_i32_0 = arith.constant 0 : i32
    %c0_i32_1 = arith.constant 0 : i32
    return %c0_i32, %c0_i32_0 : i32, i32
  }
  func.func @transform_11(%arg0: i32, %arg1: i32) -> (i32, i32) {
    %c0_i32 = arith.constant 0 : i32
    %c0_i32_0 = arith.constant 0 : i32
    %c0_i32_1 = arith.constant 0 : i32
    return %c0_i32, %c0_i32_0 : i32, i32
  }
  func.func @transform_12(%arg0: i32, %arg1: i32) -> (i32, i32, i32) {
    %c0_i32 = arith.constant 0 : i32
    %c0_i32_0 = arith.constant 0 : i32
    return %arg0, %arg1, %c0_i32 : i32, i32, i32
  }
  func.func @transform_13(%arg0: i32, %arg1: i32) -> (i32, i32, i32, i32) {
    %c0_i32 = arith.constant 0 : i32
    %c0_i32_0 = arith.constant 0 : i32
    %c0_i32_1 = arith.constant 0 : i32
    return %arg0, %c0_i32, %arg1, %c0_i32_0 : i32, i32, i32, i32
  }
}

</mosaic_0001>

<bundles_post_ra>
// kernel: tpu_custom_call.1
= control target key start
LH: loop header
LB: loop body
LE: loop exit
PB: predicated region body
PF: predicated region fallthrough
CT: control target
= control target key end

     0   :  { %s2846_s0 = inlined_call_operand.vmem [shape: f32[2,8,32], index: 0, kind: input, shape index: {}]   ;;  %s2847_s1 = inlined_call_operand.hbm [shape: bf16[2,8,8], index: 1, kind: input, shape index: {}]   ;;  %s2848_s2 = inlined_call_operand.vmem [shape: bf16[32,32], index: 2, kind: input, shape index: {}]   ;;  %s2849_s3 = inlined_call_operand.vmem [shape: bf16[32,32], index: 3, kind: input, shape index: {}]   ;;  %s2850_s4 = inlined_call_operand.hbm [shape: bf16[32,32], index: 4, kind: input, shape index: {}]   ;;  %s2851_s5 = inlined_call_operand.hbm [shape: bf16[32,32], index: 5, kind: input, shape index: {}]   ;;  %s2852_s6 = inlined_call_operand.hbm [shape: f32[1,32], index: 6, kind: input, shape index: {}]   ;;  %s2853_s7 = inlined_call_operand.hbm [shape: f32[1,32], index: 7, kind: input, shape index: {}]   ;;  %s2854_s8 = inlined_call_operand.hbm [shape: bf16[32,64], index: 8, kind: input, shape index: {}]   ;;  %s2855_s9 = inlined_call_operand.vmem [shape: bf16[64,32], index: 9, kind: input, shape index: {}]   ;;  %s2856_s10 = inlined_call_operand.vmem [shape: f32[1,32], index: 10, kind: input, shape index: {}]   ;;  %s2857_s11 = inlined_call_operand.vmem [shape: f32[1,32], index: 11, kind: input, shape index: {}]   ;;  %s2858_s12 = inlined_call_operand.hbm [shape: f32[2,8,32], index: 12, kind: output, shape index: {0}]   ;;  %s2859_s13 = inlined_call_operand.hbm [shape: f32[2,4,8,8], index: 13, kind: output, shape index: {1}]  }
   0x1   :  { %2867 = sst [smem:[#allocation24_spill]] %s2850_s4 }
   0x2   :  { %2868 = sst [smem:[#allocation25_spill]] %s2851_s5 }
   0x3   :  { %2869 = sst [smem:[#allocation26_spill]] %s2852_s6 }
   0x4   :  { %2870 = sst [smem:[#allocation27_spill]] %s2853_s7 }
   0x5   :  { %2871 = sst [smem:[#allocation28_spill]] %s2854_s8 }
   0x6   :  { %2872 = sst [smem:[#allocation29_spill]] %s2856_s10 }
   0x7   :  { %2873 = sst [smem:[#allocation30_spill]] %s2857_s11 }
   0x8   :  { %2874 = sst [smem:[#allocation31_spill]] %s2858_s12 }
   0x9   :  { %2875 = sst [smem:[#allocation32_spill]] %s2859_s13 }
   0xa   :  { %19 = vsyncpa [#allocation4], 0 }
   0xb   :  { %21 = vsyncpa [#allocation4 + $0x1], 0 }
   0xc   :  { %22 = vsyncpa [#allocation7], 0 }
   0xd   :  { %23 = vsyncpa [#allocation10], 0 }
   0xe   :  { %24 = vsyncpa [#allocation13], 0 }
   0xf   :  { %25 = vsyncpa [#allocation5], 0 }
  0x10   :  { %27 = vsyncpa [#allocation5 + $0x1], 0 }
  0x11   :  { %28 = vsyncpa [#allocation16], 0 }
  0x12   :  { %30 = vsyncpa [#allocation16 + $0x1], 0  ;;  %s2448_s25 = smov 0   ;;  %s2450_s26 = smov 0  }
  0x13   :  { %s2452_s27 = smov 0   ;;  %s2454_s28 = smov 0  }
  0x14   :  { %s2456_s29 = smov 0   ;;  %s2458_s30 = smov 0  }
  0x15 LB: > { %s2860_s14 = sadd.s32 4294967295, %s2357_s30   ;;  %p1710_p0 = scmp.ge.s32.totalorder %s2357_s30, 1  ;;  %s2357_s30 = sphi %s2458_s30, %s36_s30   ;;  %s2353_s29 = sphi %s2456_s29, %s2905_s29   ;;  %s2349_s28 = sphi %s2454_s28, %s2904_s28   ;;  %s2345_s27 = sphi %s2452_s27, %s2903_s27   ;;  %s2341_s26 = sphi %s2450_s26, %s2902_s26   ;;  %s2337_s25 = sphi %s2448_s25, %s2901_s25  }
  0x16   : > { %p2482_p1 = scmp.eq.s32.totalorder %s2860_s14, 0  ;;  %p373_p2 = scmp.lt.s32.totalorder %s2357_s30, 3 }
  0x17   : > { %s2359_s17 = smov [#allocation6]   ;;  %s2360_s20 = smov [#allocation9]  }
  0x18   : > { %s2876_s15 = scalar_select %p2482_p1, 1, 0 }
  0x19   : > { %p2487_p3 = pnand %p1710_p0, %p373_p2  ;;  %s391_s18 = sshll.u32 %s2359_s17, 4  ;;  %s392_s18 = int_to_ptr.vmem [resolvable:$true] %s391_s18 }
  0x1a   : > { %s418_s21 = sshll.u32 %s2360_s20, 4  ;;  %s2361_s22 = smov [#allocation8]   ;;  %s419_s21 = int_to_ptr.vmem [resolvable:$true] %s418_s21 }
  0x1b   : > { %s2877_s16 = scalar_select %p2487_p3, 1, 0 }
  0x1c   : > { %p1940_p4 = pneg %p2487_p3  ;;  %s404_s23 = sshll.u32 %s2361_s22, 4  ;;  %s405_s23 = int_to_ptr.vmem [resolvable:$true] %s404_s23 }
  0x1d   : > { %s2088_s17 = scalar_lea.vmem %s392_s18, 256  ;;  %p2096_p11 = scmp.lt.s32.totalorder %s392_s18, %s392_s18 }
  0x1e   : > { %p2496_p6 = pnand %p1940_p4, %p2482_p1  ;;  %p2089_p8 = scmp.ne.s32.totalorder %s392_s18, %s2088_s17 }
  0x1f   : > { %p2097_p12 = scmp.lt.s32.totalorder %s2088_s17, %s2088_s17 }
  0x20   : > { %p2502_p7 = pneg %p2496_p6 }
  0x21   : > { %p2098_p13 = por %p2097_p12, %p2096_p11 }
  0x22   : > { %p2091_p9 = pnand %p2089_p8, %p2502_p7 }
  0x24   : > { %p2092_p10 = pneg %p2091_p9 }
  0x26   : > { %p2099_p0 = pnand %p2098_p13, %p2092_p10 }
  0x28   : > { %2102 = shalt.err (!%p2099_p0)
}
  0x29   : > { %s2362_s20 = smov 64   ;;  %s2363_s22 = smov 4  }
  0x2a   : > { %s2880_s4 = sld [smem:[#allocation24_spill]]  ;;  %s2114_s11 = scalar_lea.vmem %s419_s21, 16 }
  0x2b   : > { %p2115_p2 = scmp.ne.s32.totalorder %s419_s21, %s2114_s11  ;;  %s2121_s17 = scalar_lea.vmem %s419_s21, 32 }
  0x2c   : > { %p2122_p9 = scmp.lt.s32.totalorder %s419_s21, %s419_s21  ;;  %p2123_p10 = scmp.lt.s32.totalorder %s2121_s17, %s2114_s11 }
  0x2d   : > { %p2117_p4 = pnand %p2115_p2, %p2502_p7 }
  0x2e   : > { %p2124_p11 = por %p2123_p10, %p2122_p9 }
  0x2f   : > { %p2118_p8 = pneg %p2117_p4 }
  0x30   : > { %1943 = dma.hbm_to_vmem [thread:$0]  (!%p2496_p6), %s2880_s4, 256, %s392_s18, [#allocation7], %s2362_s20, %s2362_s20, %s2363_s22  }
  0x31   : > { %p2125_p12 = pnand %p2124_p11, %p2118_p8 }
  0x33   : > { %2128 = shalt.err (!%p2125_p12)
}
  0x34   : > { %s2881_s6 = sld [smem:[#allocation26_spill]]  ;;  %s2140_s12 = scalar_lea.vmem %s405_s23, 256 }
  0x35   : > { %p2141_p13 = scmp.ne.s32.totalorder %s405_s23, %s2140_s12  ;;  %p2148_p4 = scmp.lt.s32.totalorder %s405_s23, %s405_s23 }
  0x36   : > { %p2149_p5 = scmp.lt.s32.totalorder %s2140_s12, %s2140_s12 }
  0x37   : > { %p2143_p0 = pnand %p2141_p13, %p2502_p7 }
  0x38   : > { %p2150_p3 = por %p2149_p5, %p2148_p4 }
  0x39   : > { %p2144_p2 = pneg %p2143_p0 }
  0x3a   : > { %1949 = dma.hbm_to_vmem [thread:$0]  (!%p2496_p6), %s2881_s6, 16, %s419_s21, [#allocation10]  }
  0x3b   : > { %p2151_p1 = pnand %p2150_p3, %p2144_p2 }
  0x3d   : > { %2154 = shalt.err (!%p2151_p1)
}
  0x3e   : > { %s2882_s5 = sld [smem:[#allocation25_spill]]  ;;  %s2364_s13 = smov [#allocation11]  }
  0x3f   : > { %s429_s14 = sshll.u32 %s2364_s13, 4  ;;  %s2365_s18 = smov [#allocation12]   ;;  %s430_s14 = int_to_ptr.vmem [resolvable:$true] %s429_s14 }
  0x40   : > { %s439_s21 = sshll.u32 %s2365_s18, 4  ;;  %s2166_s17 = scalar_lea.vmem %s430_s14, 16  ;;  %s440_s21 = int_to_ptr.vmem [resolvable:$true] %s439_s21 }
  0x41   : > { %p2167_p8 = scmp.ne.s32.totalorder %s430_s14, %s2166_s17  ;;  %s2173_s12 = scalar_lea.vmem %s430_s14, 32 }
  0x42   : > { %p2174_p5 = scmp.lt.s32.totalorder %s430_s14, %s430_s14  ;;  %p2175_p9 = scmp.lt.s32.totalorder %s2173_s12, %s2166_s17 }
  0x43   : > { %p2169_p3 = pnand %p2167_p8, %p2502_p7 }
  0x44   : > { %1946 = dma.hbm_to_vmem [thread:$0]  (!%p2496_p6), %s2882_s5, 256, %s405_s23, [#allocation7], %s2362_s20, %s2362_s20, %s2363_s22  }
  0x45   : > { %p2170_p1 = pneg %p2169_p3  ;;  %p2176_p10 = por %p2175_p9, %p2174_p5 }
  0x47   : > { %p2177_p11 = pnand %p2176_p10, %p2170_p1 }
  0x49   : > { %2180 = shalt.err (!%p2177_p11)
}
  0x4a   : > { %s2883_s7 = sld [smem:[#allocation27_spill]]  ;;  %s2192_s10 = scalar_lea.vmem %s440_s21, 256 }
  0x4b   : > { %p2193_p12 = scmp.ne.s32.totalorder %s440_s21, %s2192_s10  ;;  %p2200_p2 = scmp.lt.s32.totalorder %s440_s21, %s440_s21 }
  0x4c   : > { %p2201_p4 = scmp.lt.s32.totalorder %s2192_s10, %s2192_s10 }
  0x4d   : > { %p2195_p13 = pnand %p2193_p12, %p2502_p7 }
  0x4e   : > { %p2202_p8 = por %p2201_p4, %p2200_p2 }
  0x4f   : > { %p2196_p0 = pneg %p2195_p13 }
  0x50   : > { %1952 = dma.hbm_to_vmem [thread:$0]  (!%p2496_p6), %s2883_s7, 16, %s430_s14, [#allocation10]  }
  0x51   : > { %p2203_p3 = pnand %p2202_p8, %p2196_p0 }
  0x53   : > { %2206 = shalt.err (!%p2203_p3)
}
  0x54   : > { %s2884_s8 = sld [smem:[#allocation28_spill]]  ;;  %s1709_s19 = sadd.s32 4294967294, %s2357_s30  }
  0x55   : > { %s48_s24 = sadd.s32 1, %s2353_s29  ;;  %s83_s14 = sadd.s32 1, %s2345_s27 }
  0x56   : > { %p50_p7 = scmp.ge.s32.totalorder %s48_s24, 2  ;;  %p90_p1 = scmp.ne.s32.totalorder %s2345_s27, %s2341_s26 }
  0x57   : > { %p91_p5 = scmp.eq.s32.totalorder %s2357_s30, 0  ;;  %p96_p9 = scmp.ne.s32.totalorder %s2341_s26, %s2337_s25 }
  0x58   : > { %s2907_s24 = smov (%p50_p7, %s48_s24), 0  ;;  %p2887_p11 = scmp.ne.s32.totalorder %s2876_s15, 0 }
  0x59   : > { %2885 = sst [smem:[#allocation23_spill]] %s2907_s24  ;;  %p2560_p10 = por %p91_p5, %p90_p1 }
  0x5a   : > { %1955 = dma.hbm_to_vmem [thread:$0]  (!%p2496_p6), %s2884_s8, 256, %s440_s21, [#allocation13], %s2362_s20, %s2362_s20, %s2363_s22  }
  0x5b   : > { %p2566_p6 = por %p2887_p11, %p96_p9  ;;  %s78_s22 = ssub.s32 %s2353_s29, %s2907_s24 }
  0x5c   : > { %s2889_s21 = sadd.s32 4294967295, %s2357_s30   ;;  %p81_p13 = scmp.eq.s32.totalorder %s78_s22, 0 }
  0x5d   : > { %p332_p12 = scmp.eq.s32.totalorder %s2889_s21, 1  ;;  %p338_p0 = scmp.eq.s32.totalorder %s1709_s19, 1 }
  0x5e   : > { %p1972_p4 = scmp.lt.s32.totalorder %s2357_s30, 2  ;;  %s469_s10 = sand.u32 1, %s2345_s27  }
  0x5f   : > { %p2574_p2 = por %p332_p12, %p90_p1  ;;  %p2582_p8 = por %p338_p0, %p96_p9 }
  0x60   : > { %s2580_s11 = scalar_select %p81_p13, %s2345_s27, %s83_s14  }
  0x61   : > { %s1717_s13 = sshll.u32 %s469_s10, 2  ;;  %s1718_s18 = sshll.u32 %s2353_s29, 6 }
  0x62   : > { %s479_s21 = scalar_lea.hbm %s2847_s1, %s1718_s18  ;;  %s473_s22 = scalar_lea.vmem [#allocation3], %s1717_s13 }
  0x63   : > { %s481_s19 = sshll.u32 %s473_s22, 4  ;;  %p2593_p3 = pnand %p1972_p4, %p2560_p10  ;;  %s482_s19 = int_to_ptr.vmem [resolvable:$true] %s481_s19 }
  0x64   : > { %s470_s14 = scalar_lea.sflag [#allocation4], %s469_s10  ;;  %s2220_s7 = scalar_lea.vmem %s482_s19, 64 }
  0x65   : > { %p2209_p7 = pneg %p2593_p3  ;;  %p2221_p1 = scmp.ne.s32.totalorder %s482_s19, %s2220_s7 }
  0x66   : > { %s2366_s8 = smov [#allocation3]  }
  0x67   : > { %p2223_p5 = pnand %p2221_p1, %p2209_p7  ;;  %s2225_s24 = sshll.u32 %s2366_s8, 4  ;;  %s2226_s24 = int_to_ptr.vmem [resolvable:$false] %s2225_s24 }
  0x68   : > { %s2227_s4 = scalar_lea.vmem %s2226_s24, 128  ;;  %p2228_p11 = scmp.lt.s32.totalorder %s482_s19, %s2226_s24 }
  0x69   : > { %p2224_p9 = pneg %p2223_p5  ;;  %p2229_p12 = scmp.lt.s32.totalorder %s2227_s4, %s2220_s7 }
  0x6b   : > { %p2230_p13 = por %p2229_p12, %p2228_p11 }
  0x6d   : > { %p2231_p0 = pnand %p2230_p13, %p2224_p9 }
  0x6f   : > { %2234 = shalt.err (!%p2231_p0)
}
  0x70   : > { %1959 = dma.hbm_to_vmem [thread:$0]  (!%p2593_p3), %s479_s21, 64, %s482_s19, %s470_s14  }
  0x71   : > { %p2893_p10 = scmp.ne.s32.totalorder %s2877_s16, 0 }
  0x72   : > { %s2604_s5 = sand.u32 (!%p2893_p10), 1, %s2341_s26  }
  0x73   : > { %490 = sbr.rel (%p2893_p10) target bundleno = 2517 (0x9d5), region = 68  ;;  %s1720_s8 = sshll.u32 (!%p2893_p10), %s2604_s5, 2 }
  0x74   : > { %s493_s17 = scalar_lea.sflag (!%p2893_p10), [#allocation4], %s2604_s5  ;;  %s2608_s10 = scalar_lea.vmem (!%p2893_p10), [#allocation3], %s1720_s8 }
  0x78   : > { %2312 = dma.done.wait (%p2566_p6), %s493_s17, 64  }
  0x79   : > { %2314 = vsyncadd (%p2566_p6), %s493_s17, 4294967232  ;;  %p2894_p4 = scmp.ne.s32.totalorder %s2876_s15, 0 }
  0x7b   : > { %2316 = dma.done.wait (%p2894_p4), [#allocation7], 512  }
  0x7c   : > { %2318 = vsyncadd (%p2894_p4), [#allocation7], 4294966784 }
  0x7d   : > { %2320 = dma.done.wait (%p2894_p4), [#allocation10], 32  }
  0x7e   : > { %2322 = vsyncadd (%p2894_p4), [#allocation10], 4294967264 }
  0x7f   : > { %2324 = dma.done.wait (%p2894_p4), [#allocation13], 256  }
  0x80   : > { %2326 = vsyncadd (%p2894_p4), [#allocation13], 4294967040  ;;  %p568_p6 = scmp.lt.s32.totalorder %s2349_s28, 1  ;;  %v2367_v0 = vmov 0.0   ;;  %vm2368_vm0 = vmmov 0   ;;  %v2043_v1 = vld [vmem:[%s2848_s2 + $0x8] sm:$0xff]  }
  0x81   : > { %1814 = vmatprep.subr.bf16.mxu0 %v2367_v0  ;;  %1822 = vmatprep.subr.bf16.mxu1 %v2367_v0  ;;  %v2044_v2 = vld [vmem:[%s2849_s3 + $0x8] sm:$0xff]   ;;  %v2045_v3 = vld [vmem:[%s2848_s2] sm:$0xff]   ;;  %vm595_vm1 = vcmask 261120   ;;  %vm760_vm2 = vcmask 64512   ;;  %s2369_s8 = smov 112   ;;  %s2370_s17 = smov 120  }
  0x82   : > { %1818 = vmatprep.mubr.msk.bf16.mxu0 %vm2368_vm0, %v2367_v0  ;;  %1826 = vmatprep.mubr.msk.bf16.mxu1 %vm2368_vm0, %v2367_v0  ;;  %s569_s6 = scalar_select %p568_p6, %s2349_s28, 1  ;;  %v2046_v4 = vld [vmem:[%s2849_s3] sm:$0xff]   ;;  %v2047_v19 = vld [vmem:[#allocation6 + $0x8] sm:$0xff]   ;;  %v2048_v20 = vld [vmem:[#allocation6] sm:$0xff]   ;;  %vm823_vm3 = vcmask 1043456   ;;  %vm868_vm4 = vcmask 60416  }
  0x83   : > { %1815 = vmatpush3.bf16.msra.mxu0 %v2043_v1  ;;  %1823 = vmatpush3.bf16.msra.mxu1 %v2044_v2  ;;  %v758_v30 = vld [vmem:[%s2608_s10] sm:$0xf]  ;;  %s1727_s10 = sshll.u32 %s2604_s5, 5  ;;  %s2372_s16 = smov 8   ;;  %vm992_vm5 = vcmask 126016   ;;  %vm1113_vm6 = vcmask 191616  }
  0x84   : > { %s1728_s7 = sshll.u32 %s569_s6, 3  ;;  %1816 = vmatprep.subr.bf16.mxu0 %v2367_v0  ;;  %1824 = vmatprep.subr.bf16.mxu1 %v2367_v0  ;;  %s2371_s6 = smov 104   ;;  %v759_v31 = vunpack.c.l.bf16 %v758_v30  ;;  %vm1234_vm7 = vcmask 257216   ;;  %vm1420_vm8 = vcmask 523264  }
  0x85   : > { %s571_s21 = scalar_lea.vmem %s2846_s0, %s1728_s7  ;;  %s2709_s7 = scalar_lea.vmem [#allocation15], %s1727_s10 }
  0x86   : > { %v2651_v5 = vld [vmem:[%s571_s21] sm:$0xff]  ;;  %s2373_s15 = smov 16   ;;  %s2374_s24 = smov 24  }
  0x87   : > { %v576_v6 = vpack.c.bf16 %v2651_v5, %v2651_v5  ;;  %1817 = vmatpush3.bf16.msra.mxu0 %v2045_v3  ;;  %1825 = vmatpush3.bf16.msra.mxu1 %v2046_v4  ;;  %s1501_s20 = scalar_lea.sflag [#allocation16], %s2604_s5  ;;  %s2375_s18 = smov [#allocation15]  }
  0x88   : > { %1830 = vmatprep.subr.bf16.mxu0 %v2367_v0  ;;  %1838 = vmatprep.subr.bf16.mxu1 %v2367_v0  ;;  %s2239_s21 = sshll.u32 %s2375_s18, 4  ;;  %s2240_s21 = int_to_ptr.vmem [resolvable:$false] %s2239_s21 }
  0x8a   : > { %1819 = vmatmul.mubr.msk.bf16.vlgmr.msra.gmra.mxu0 %vm595_vm1, %v576_v6  ;;  %1827 = vmatmul.mubr.msk.bf16.vlgmr.msra.gmra.mxu1 %vm595_vm1, %v576_v6 }
  0x8b   : > { %1834 = vmatprep.mubr.msk.bf16.mxu0 %vm2368_vm0, %v2367_v0  ;;  %1840 = vmatprep.mubr.msk.bf16.mxu1 %vm2368_vm0, %v2367_v0 }
  0x8c   : > { %1831 = vmatpush3.bf16.msra.mxu0 %v2047_v19 }
  0x8d   : > { %1832 = vmatprep.subr.bf16.mxu0 %v2367_v0 }
  0x90   : > { %1833 = vmatpush3.bf16.msra.mxu0 %v2048_v20 }
  0x91   : > { %1844 = vmatprep.subr.bf16.mxu0 %v2367_v0 }
  0x93   : > { %1835 = vmatmul.mubr.msk.bf16.vlgmr.msra.gmra.mxu0 %vm595_vm1, %v576_v6 }
  0x94   : > { %1846 = vmatprep.mubr.msk.bf16.mxu0 %vm2368_vm0, %v2367_v0 }
 0x14a   : > { %v633_v7 = vpop.f32.mrf.mxu0  ;;  %v694_v9 = vpop.f32.mrf.mxu1 }
 0x14b   : > { %v639_v8 = vmul.f32 0.17677669, %v633_v7  ;;  %v700_v10 = vpack.c.bf16 %v694_v9, %v694_v9 }
 0x14c   : > { %v1820_v11 = vpop.f32.mrf.mxu0  ;;  %v1828_v12 = vpop.f32.mrf.mxu1 }
 0x14d   : > { %v640_v13 = vpack.c.bf16 %v639_v8, %v639_v8  ;;  %996 = vrot.lane.b32.xlu1 %v700_v10, %s2369_s8  ;;  %874 = vrot.lane.b32.xlu0 %v700_v10, %s2370_s17  ;;  %v765_v15 = vsel %vm760_vm2, %v700_v10, 0 }
 0x14e   : > { %v636_v14 = vpop.f32.mrf.mxu0  ;;  %v697_v16 = vpop.f32.mrf.mxu1  ;;  %1839 = vmatpush3.bf16.xpose.msra.mxu1 %v765_v15 }
 0x14f   : > { %1850 = vmatprep.subr.bf16.mxu1 %v2367_v0 }
 0x150   : > { %v1821_v17 = vpop.f32.mrf.mxu0  ;;  %v1829_v18 = vpop.f32.mrf.mxu1 }
 0x151   : > { %994 = vrot.lane.b32.xlu1 %v640_v13, %s2369_s8  ;;  %871 = vrot.lane.b32.xlu0 %v640_v13, %s2370_s17 }
 0x153   : > { %v751_v38 = vpop.f32.mrf.mxu0 }
 0x154   : > { %v757_v39 = vpack.c.bf16 %v751_v38, %v751_v38 }
 0x155   : > { %1115 = vrot.lane.b32.xlu1 %v640_v13, %s2371_s6  ;;  %1117 = vrot.lane.b32.xlu0 %v700_v10, %s2371_s6  ;;  %v1836_v40 = vpop.f32.mrf.mxu0 }
 0x156   : > { %1841 = vmatmul.mubr.msk.bf16.vlgmr.msra.gmra.mxu1 %vm760_vm2, %v640_v13  ;;  %v825_v41 = vsel %vm823_vm3, %v757_v39, 0 }
 0x157   : > { %1852 = vmatprep.mubr.msk.bf16.mxu1 %vm2368_vm0, %v2367_v0  ;;  %v754_v42 = vpop.f32.mrf.mxu0  ;;  %1845 = vmatpush3.bf16.msra.mxu0 %v825_v41 }
 0x158   : > { %1856 = vmatprep.subr.bf16.mxu0 %v2367_v0 }
 0x159   : > { %v1837_v43 = vpop.f32.mrf.mxu0 }
 0x1bf   : > { %v875_v21 = vpop.permute.xlu0 %874  ;;  %v997_v23 = vpop.permute.xlu1 %996 }
 0x1c0   : > { %v880_v22 = vsel %vm760_vm2, %v875_v21, 0  ;;  %v1002_v25 = vsel %vm760_vm2, %v997_v23, 0 }
 0x1c1   : > { %1851 = vmatpush3.bf16.xpose.msra.mxu1 %v880_v22 }
 0x1c2   : > { %1862 = vmatprep.subr.bf16.mxu1 %v2367_v0 }
 0x1c3   : > { %v872_v24 = vpop.permute.xlu0 %871  ;;  %v995_v27 = vpop.permute.xlu1 %994 }
 0x1c7   : > { %v1118_v26 = vpop.permute.xlu0 %1117  ;;  %v1116_v29 = vpop.permute.xlu1 %1115 }
 0x1c8   : > { %1853 = vmatmul.mubr.msk.bf16.vlgmr.msra.gmra.mxu1 %vm760_vm2, %v872_v24  ;;  %v1123_v28 = vsel %vm760_vm2, %v1118_v26, 0 }
 0x1c9   : > { %1863 = vmatpush3.bf16.xpose.msra.mxu1 %v1002_v25  ;;  %1864 = vmatprep.mubr.msk.bf16.mxu1 %vm2368_vm0, %v2367_v0 }
 0x1ca   : > { %1874 = vmatprep.subr.bf16.mxu1 %v2367_v0 }
 0x1d0   : > { %1865 = vmatmul.mubr.msk.bf16.vlgmr.msra.gmra.mxu1 %vm760_vm2, %v995_v27 }
 0x1d1   : > { %1875 = vmatpush3.bf16.xpose.msra.mxu1 %v1123_v28  ;;  %1876 = vmatprep.mubr.msk.bf16.mxu1 %vm2368_vm0, %v2367_v0 }
 0x1d2   : > { %1886 = vmatprep.subr.bf16.mxu1 %v2367_v0 }
 0x1d8   : > { %1877 = vmatmul.mubr.msk.bf16.vlgmr.msra.gmra.mxu1 %vm760_vm2, %v1116_v29 }
 0x1d9   : > { %1890 = vmatprep.mubr.msk.bf16.mxu1 %vm2368_vm0, %v2367_v0 }
 0x216   : > { %v801_v32 = vpop.f32.mrf.mxu1 }
 0x217   : > { %v802_v33 = vadd.f32 %v801_v32, %v759_v31 }
 0x218   : > { %v1842_v34 = vpop.f32.mrf.mxu1 }
 0x219   : > { %v807_v35 = vsel %vm760_vm2, %v802_v33, -inf }
 0x21a   : > { %808 = vmax.xlane.f32.xlu0 %v807_v35  ;;  %v804_v36 = vpop.f32.mrf.mxu1 }
 0x21c   : > { %v1843_v37 = vpop.f32.mrf.mxu1 }
 0x288   : > { %v916_v44 = vpop.f32.mrf.mxu1 }
 0x289   : > { %v917_v45 = vadd.f32 %v916_v44, %v759_v31 }
 0x28a   : > { %v1854_v46 = vpop.f32.mrf.mxu1 }
 0x28b   : > { %v922_v47 = vsel %vm760_vm2, %v917_v45, -inf }
 0x28c   : > { %923 = vmax.xlane.f32.xlu1 %v922_v47  ;;  %v919_v48 = vpop.f32.mrf.mxu1 }
 0x28e   : > { %v1855_v49 = vpop.f32.mrf.mxu1 }
 0x290   : > { %v1038_v50 = vpop.f32.mrf.mxu1 }
 0x291   : > { %v1039_v51 = vadd.f32 %v1038_v50, %v759_v31 }
 0x292   : > { %v1866_v52 = vpop.f32.mrf.mxu1 }
 0x293   : > { %v1044_v53 = vsel %vm760_vm2, %v1039_v51, -inf  ;;  %v2049_v52 = vld [vmem:[#allocation8 + $0x8] sm:$0xff]  }
 0x294   : > { %1045 = vmax.xlane.f32.xlu0 %v1044_v53  ;;  %v1041_v54 = vpop.f32.mrf.mxu1  ;;  %1887 = vmatpush3.bf16.msra.mxu1 %v2049_v52 }
 0x295   : > { %v2050_v54 = vld [vmem:[#allocation8] sm:$0xff]   ;;  %1888 = vmatprep.subr.bf16.mxu1 %v2367_v0 }
 0x296   : > { %v1867_v55 = vpop.f32.mrf.mxu1 }
 0x298   : > { %v1159_v56 = vpop.f32.mrf.mxu1  ;;  %1889 = vmatpush3.bf16.msra.mxu1 %v2050_v54 }
 0x299   : > { %v1160_v57 = vadd.f32 %v1159_v56, %v759_v31  ;;  %1902 = vmatprep.subr.bf16.mxu1 %v2367_v0 }
 0x29a   : > { %v1878_v58 = vpop.f32.mrf.mxu1 }
 0x29b   : > { %v1165_v59 = vsel %vm760_vm2, %v1160_v57, -inf }
 0x29c   : > { %1166 = vmax.xlane.f32.xlu0 %v1165_v59  ;;  %v1162_v60 = vpop.f32.mrf.mxu1 }
 0x29e   : > { %v1879_v61 = vpop.f32.mrf.mxu1 }
 0x2a3   : > { %v809_v62 = vpop.xlane.xlu0 %808 }
 0x2a4   : > { %v810_v63 = vsub.f32 %v802_v33, %v809_v62 }
 0x2a6   : > { %v811_v1 = vmul.f32 1.442695, %v810_v63 }
 0x2a8   : > { %2057 = vpow2.f32 %v811_v1 }
 0x2b5   : > { %v2058_v2 = vpop.eup %2057 }
 0x2b6   : > { %v813_v3 = vsel %vm760_vm2, %v2058_v2, 0.0 }
 0x2b7   : > { %814 = vadd.xlane.f32.xlu1 %v813_v3 }
 0x2c8   : > { %937 = vrot.lane.b32.xlu1 %v757_v39, %s2370_s17  ;;  %s1529_s17 = sshll.u32 %s2709_s7, 4  ;;  %s2772_s17 = int_to_ptr.vmem [resolvable:$true] %s1529_s17 }
 0x2c9   : > { %s2235_s13 = scalar_lea.vmem %s2772_s17, 512  ;;  %p2242_p5 = scmp.lt.s32.totalorder %s2772_s17, %s2240_s21 }
 0x2ca   : > { %p2236_p3 = scmp.ne.s32.totalorder %s2772_s17, %s2235_s13 }
 0x2cc   : > { %p2237_p7 = pnand %p2236_p3, %p2574_p2 }
 0x2ce   : > { %p2238_p1 = pneg %p2237_p7 }
 0x315   : > { %v924_v4 = vpop.xlane.xlu1 %923 }
 0x316   : > { %v925_v6 = vsub.f32 %v917_v45, %v924_v4 }
 0x318   : > { %v926_v7 = vmul.f32 1.442695, %v925_v6 }
 0x31a   : > { %2059 = vpow2.f32 %v926_v7 }
 0x31d   : > { %v1046_v8 = vpop.xlane.xlu0 %1045 }
 0x31e   : > { %v1047_v9 = vsub.f32 %v1039_v51, %v1046_v8 }
 0x320   : > { %v1048_v10 = vmul.f32 1.442695, %v1047_v9 }
 0x322   : > { %2061 = vpow2.f32 %v1048_v10 }
 0x325   : > { %v1167_v11 = vpop.xlane.xlu0 %1166 }
 0x326   : > { %v1168_v12 = vsub.f32 %v1160_v57, %v1167_v11 }
 0x327   : > { %v2060_v13 = vpop.eup %2059 }
 0x328   : > { %v1169_v14 = vmul.f32 1.442695, %v1168_v12  ;;  %v928_v15 = vsel %vm760_vm2, %v2060_v13, 0.0 }
 0x329   : > { %929 = vadd.xlane.f32.xlu0 %v928_v15 }
 0x32a   : > { %2063 = vpow2.f32 %v1169_v14 }
 0x32f   : > { %v2062_v16 = vpop.eup %2061 }
 0x330   : > { %v1050_v17 = vsel %vm760_vm2, %v2062_v16, 0.0 }
 0x331   : > { %1051 = vadd.xlane.f32.xlu1 %v1050_v17  ;;  %v2051_v17 = vld [vmem:[#allocation12 + $0x8] sm:$0xff]  }
 0x337   : > { %v2064_v18 = vpop.eup %2063 }
 0x338   : > { %v1171_v19 = vsel %vm760_vm2, %v2064_v18, 0.0 }
 0x339   : > { %1172 = vadd.xlane.f32.xlu0 %v1171_v19  ;;  %v2054_v19 = vld [vmem:[%s2855_s9 + $0x10] sm:$0xff]  }
 0x340   : > { %v815_v20 = vpop.xlane.xlu1 %814 }
 0x341   : > { %2065 = vrcp.f32 %v815_v20  ;;  %v2055_v20 = vld [vmem:[%s2855_s9 + $0x8] sm:$0xff]  }
 0x342   : > { %1179 = vrot.lane.b32.xlu1 %v757_v39, %s2371_s6 }
 0x344   : > { %v938_v22 = vpop.permute.xlu1 %937 }
 0x345   : > { %v943_v25 = vsel %vm823_vm3, %v938_v22, 0 }
 0x34e   : > { %v2066_v21 = vpop.eup %2065 }
 0x34f   : > { %1058 = vrot.lane.b32.xlu0 %v757_v39, %s2369_s8  ;;  %v817_v23 = vmul.f32 %v2066_v21, %v2058_v2  ;;  %s1777_s8 = sshll.u32 %s2349_s28, 9 }
 0x351   : > { %818 = vst.msk [vmem:[%s2709_s7] sm:$0xff] %vm760_vm2, %v817_v23  ;;  %v819_v24 = vpack.c.bf16 %v817_v23, %v817_v23 }
 0x353   : > { %1847 = vmatmul.mubr.msk.bf16.vlgmr.msra.gmra.mxu0 %vm760_vm2, %v819_v24 }
 0x354   : > { %1857 = vmatpush3.bf16.msra.mxu0 %v943_v25  ;;  %1858 = vmatprep.mubr.msk.bf16.mxu0 %vm2368_vm0, %v2367_v0  ;;  %v1755_v25 = vld [vmem:[#allocation9] ss:$0 sm:$0xff] }
 0x355   : > { %1868 = vmatprep.subr.bf16.mxu0 %v2367_v0 }
 0x3b2   : > { %v930_v26 = vpop.xlane.xlu0 %929 }
 0x3b3   : > { %2067 = vrcp.f32 %v930_v26 }
 0x3ba   : > { %v1052_v27 = vpop.xlane.xlu1 %1051 }
 0x3bb   : > { %2069 = vrcp.f32 %v1052_v27  ;;  %v1756_v27 = vld [vmem:[#allocation11] ss:$0 sm:$0xff] }
 0x3be   : > { %v1180_v36 = vpop.permute.xlu1 %1179 }
 0x3bf   : > { %v1185_v38 = vsel %vm823_vm3, %v1180_v36, 0 }
 0x3c0   : > { %v2068_v28 = vpop.eup %2067 }
 0x3c1   : > { %v932_v29 = vmul.f32 %v2068_v28, %v2060_v13 }
 0x3c2   : > { %v1173_v30 = vpop.xlane.xlu0 %1172 }
 0x3c3   : > { %2071 = vrcp.f32 %v1173_v30  ;;  %1741 = vst.msk [vmem:[%s2709_s7 + $0x8] sm:$0xff] %vm760_vm2, %v932_v29  ;;  %v935_v31 = vpack.c.bf16 %v932_v29, %v932_v29 }
 0x3c5   : > { %1859 = vmatmul.mubr.msk.bf16.vlgmr.msra.gmra.mxu0 %vm760_vm2, %v935_v31  ;;  %v2056_v31 = vld [vmem:[%s2855_s9] sm:$0xff]  }
 0x3c6   : > { %v1059_v32 = vpop.permute.xlu0 %1058  ;;  %1870 = vmatprep.mubr.msk.bf16.mxu0 %vm2368_vm0, %v2367_v0 }
 0x3c7   : > { %v1064_v33 = vsel %vm823_vm3, %v1059_v32, 0 }
 0x3c8   : > { %v2070_v34 = vpop.eup %2069  ;;  %1869 = vmatpush3.bf16.msra.mxu0 %v1064_v33 }
 0x3c9   : > { %1880 = vmatprep.subr.bf16.mxu0 %v2367_v0  ;;  %v1054_v35 = vmul.f32 %v2070_v34, %v2062_v16 }
 0x3cb   : > { %1745 = vst.msk [vmem:[%s2709_s7 + $0x10] sm:$0xff] %vm760_vm2, %v1054_v35  ;;  %v1057_v37 = vpack.c.bf16 %v1054_v35, %v1054_v35 }
 0x3cd   : > { %1871 = vmatmul.mubr.msk.bf16.vlgmr.msra.gmra.mxu0 %vm760_vm2, %v1057_v37 }
 0x3ce   : > { %1881 = vmatpush3.bf16.msra.mxu0 %v1185_v38  ;;  %1882 = vmatprep.mubr.msk.bf16.mxu0 %vm2368_vm0, %v2367_v0 }
 0x3cf   : > { %1894 = vmatprep.subr.bf16.mxu0 %v2367_v0 }
 0x3d0   : > { %v2072_v39 = vpop.eup %2071 }
 0x3d1   : > { %v1175_v40 = vmul.f32 %v2072_v39, %v2064_v18  ;;  %v2052_v18 = vld [vmem:[#allocation12] sm:$0xff]  }
 0x3d3   : > { %1749 = vst.msk [vmem:[%s2709_s7 + $0x18] sm:$0xff] %vm760_vm2, %v1175_v40  ;;  %v1178_v41 = vpack.c.bf16 %v1175_v40, %v1175_v40  ;;  %s2241_s7 = scalar_lea.vmem %s2240_s21, 1024 }
 0x3d4   : > { %p2243_p9 = scmp.lt.s32.totalorder %s2241_s7, %s2235_s13 }
 0x3d5   : > { %1883 = vmatmul.mubr.msk.bf16.vlgmr.msra.gmra.mxu0 %vm760_vm2, %v1178_v41 }
 0x3d6   : > { %1898 = vmatprep.mubr.msk.bf16.mxu0 %vm2368_vm0, %v2367_v0  ;;  %1895 = vmatpush3.bf16.msra.mxu0 %v2051_v17  ;;  %p2244_p11 = por %p2243_p9, %p2242_p5 }
 0x3d7   : > { %1896 = vmatprep.subr.bf16.mxu0 %v2367_v0 }
 0x3d8   : > { %p2245_p12 = pnand %p2244_p11, %p2238_p1 }
 0x3da   : > { %1897 = vmatpush3.bf16.msra.mxu0 %v2052_v18 }
 0x413   : > { %v861_v42 = vpop.f32.mrf.mxu0 }
 0x414   : > { %v867_v43 = vpack.c.bf16 %v861_v42, %v861_v42 }
 0x415   : > { %v1848_v44 = vpop.f32.mrf.mxu0 }
 0x416   : > { %869 = vst.msk [vmem:[#allocation2] sm:$0xf] %vm868_vm4, %v867_v43 }
 0x417   : > { %v864_v45 = vpop.f32.mrf.mxu0 }
 0x419   : > { %v1849_v46 = vpop.f32.mrf.mxu0 }
 0x485   : > { %v979_v47 = vpop.f32.mrf.mxu0 }
 0x486   : > { %v1774_v48 = vpack.c.bf16 %v979_v47, %v979_v47 }
 0x487   : > { %v1860_v49 = vpop.f32.mrf.mxu0 }
 0x488   : > { %989 = vrot.lane.b32.xlu1 %v1774_v48, %s2372_s16 }
 0x489   : > { %v982_v50 = vpop.f32.mrf.mxu0 }
 0x48b   : > { %v1861_v51 = vpop.f32.mrf.mxu0 }
 0x48d   : > { %v1100_v53 = vpop.f32.mrf.mxu0 }
 0x48e   : > { %v1775_v55 = vpack.c.bf16 %v1100_v53, %v1100_v53 }
 0x48f   : > { %v1872_v56 = vpop.f32.mrf.mxu0 }
 0x490   : > { %1110 = vrot.lane.b32.xlu0 %v1775_v55, %s2373_s15  ;;  %s2895_s15 = sld [smem:[#allocation32_spill]] }
 0x491   : > { %v1103_v57 = vpop.f32.mrf.mxu0 }
 0x493   : > { %v1873_v58 = vpop.f32.mrf.mxu0 }
 0x495   : > { %v1221_v59 = vpop.f32.mrf.mxu0 }
 0x496   : > { %v1776_v60 = vpack.c.bf16 %v1221_v59, %v1221_v59 }
 0x497   : > { %v1884_v61 = vpop.f32.mrf.mxu0 }
 0x498   : > { %1231 = vrot.lane.b32.xlu1 %v1776_v60, %s2374_s24  ;;  %s2770_s24 = scalar_lea.hbm %s2895_s15, %s1777_s8 }
 0x499   : > { %v1224_v62 = vpop.f32.mrf.mxu0 }
 0x49b   : > { %v1885_v63 = vpop.f32.mrf.mxu0 }
 0x4fa   : > { %v990_v1 = vpop.permute.xlu1 %989 }
 0x4fb   : > { %993 = vst.msk [vmem:[#allocation2] sm:$0xf] %vm992_vm5, %v990_v1 }
 0x502   : > { %v1111_v2 = vpop.permute.xlu0 %1110 }
 0x503   : > { %1114 = vst.msk [vmem:[#allocation2] sm:$0xf] %vm1113_vm6, %v1111_v2 }
 0x50a   : > { %v1232_v3 = vpop.permute.xlu1 %1231 }
 0x50b   : > { %1235 = vst.msk [vmem:[#allocation2] sm:$0xf] %vm1234_vm7, %v1232_v3 }
 0x512   : > { %v1236_v4 = vld [vmem:[#allocation2] sm:$0xf] }
 0x513   : > { %1891 = vmatmul.mubr.msk.bf16.vlgmr.msra.gmra.mxu1 %vm595_vm1, %v1236_v4 }
 0x514   : > { %1910 = vmatprep.mubr.msk.bf16.mxu1 %vm2368_vm0, %v2367_v0 }
 0x5d3   : > { %v1290_v6 = vpop.f32.mrf.mxu1 }
 0x5d4   : > { %v1291_v7 = vadd.f32 %v1290_v6, %v2651_v5  ;;  %v2053_v5 = vld [vmem:[%s2855_s9 + $0x18] sm:$0xff]  }
 0x5d5   : > { %v1892_v8 = vpop.f32.mrf.mxu1  ;;  %1903 = vmatpush3.bf16.msra.mxu1 %v2053_v5 }
 0x5d6   : > { %v1298_v9 = vsel %vm595_vm1, %v1291_v7, 0.0  ;;  %1904 = vmatprep.subr.bf16.mxu1 %v2367_v0 }
 0x5d7   : > { %1299 = vadd.xlane.f32.xlu0 %v1298_v9  ;;  %v1293_v10 = vpop.f32.mrf.mxu1 }
 0x5d9   : > { %v1893_v11 = vpop.f32.mrf.mxu1  ;;  %1905 = vmatpush3.bf16.msra.mxu1 %v2054_v19 }
 0x5da   : > { %1906 = vmatprep.subr.bf16.mxu1 %v2367_v0 }
 0x5dd   : > { %1907 = vmatpush3.bf16.msra.mxu1 %v2055_v20 }
 0x5de   : > { %1908 = vmatprep.subr.bf16.mxu1 %v2367_v0 }
 0x5e1   : > { %1909 = vmatpush3.bf16.msra.mxu1 %v2056_v31 }
 0x660   : > { %v1300_v12 = vpop.xlane.xlu0 %1299 }
 0x661   : > { %v1302_v13 = vmul.f32 0.03125, %v1300_v12 }
 0x663   : > { %v1303_v14 = vsub.f32 %v1291_v7, %v1302_v13 }
 0x665   : > { %v1304_v15 = vmul.f32 %v1303_v14, %v1303_v14 }
 0x667   : > { %v1305_v16 = vsel %vm595_vm1, %v1304_v15, 0.0 }
 0x668   : > { %1306 = vadd.xlane.f32.xlu1 %v1305_v16 }
 0x6f1   : > { %v1307_v21 = vpop.xlane.xlu1 %1306 }
 0x6f2   : > { %v1308_v22 = vmul.f32 0.03125, %v1307_v21 }
 0x6f4   : > { %v1309_v23 = vadd.f32 1e-05, %v1308_v22 }
 0x6f6   : > { %2073 = vrsqrt.f32 %v1309_v23 }
 0x703   : > { %v2074_v24 = vpop.eup %2073 }
 0x704   : > { %v1311_v26 = vmul.f32 %v2074_v24, %v1303_v14 }
 0x706   : > { %v1318_v28 = vmul.f32 %v1755_v25, %v1311_v26 }
 0x708   : > { %v1325_v29 = vadd.f32 %v1756_v27, %v1318_v28 }
 0x70a   : > { %v1326_v30 = vpack.c.bf16 %v1325_v29, %v1325_v29 }
 0x70c   : > { %1899 = vmatmul.mubr.msk.bf16.vlgmr.msra.gmra.mxu0 %vm595_vm1, %v1326_v30 }
 0x7cc   : > { %v1380_v32 = vpop.f32.mrf.mxu0 }
 0x7cd   : > { %v1386_v0 = vmax.f32 %v1380_v32, 0.0 }
 0x7ce   : > { %v1900_v33 = vpop.f32.mrf.mxu0 }
 0x7cf   : > { %v1387_v34 = vpack.c.bf16 %v1386_v0, %v1386_v0 }
 0x7d0   : > { %v1383_v35 = vpop.f32.mrf.mxu0 }
 0x7d1   : > { %1911 = vmatmul.mubr.msk.bf16.vlgmr.msra.gmra.mxu1 %vm1420_vm8, %v1387_v34 }
 0x7d2   : > { %v1901_v36 = vpop.f32.mrf.mxu0 }
 0x891   : > { %v1458_v37 = vpop.f32.mrf.mxu1 }
 0x892   : > { %v1464_v38 = vadd.f32 %v1458_v37, %v1325_v29 }
 0x893   : > { %v1912_v39 = vpop.f32.mrf.mxu1 }
 0x894   : > { %v1467_v40 = vsel %vm595_vm1, %v1464_v38, 0.0 }
 0x895   : > { %1468 = vadd.xlane.f32.xlu0 %v1467_v40  ;;  %v1461_v41 = vpop.f32.mrf.mxu1 }
 0x897   : > { %v1913_v42 = vpop.f32.mrf.mxu1 }
 0x91e   : > { %v1469_v43 = vpop.xlane.xlu0 %1468 }
 0x91f   : > { %v1470_v44 = vmul.f32 0.03125, %v1469_v43 }
 0x921   : > { %v1471_v45 = vsub.f32 %v1464_v38, %v1470_v44 }
 0x923   : > { %v1472_v46 = vmul.f32 %v1471_v45, %v1471_v45 }
 0x925   : > { %v1473_v47 = vsel %vm595_vm1, %v1472_v46, 0.0 }
 0x926   : > { %1474 = vadd.xlane.f32.xlu0 %v1473_v47 }
 0x927   : > { %2248 = shalt.err (!%p2245_p12)
}
 0x928   : > { %s2249_s22 = scalar_lea.hbm %s2770_s24, 512  ;;  %s2253_s4 = scalar_lea.hbm %s2895_s15, 1024 }
 0x929   : > { %p2250_p13 = scmp.ne.s32.totalorder %s2770_s24, %s2249_s22  ;;  %p2254_p4 = scmp.lt.s32.totalorder %s2770_s24, %s2895_s15 }
 0x92a   : > { %p2255_p6 = scmp.lt.s32.totalorder %s2253_s4, %s2249_s22 }
 0x92b   : > { %p2251_p0 = pnand %p2250_p13, %p2574_p2 }
 0x92c   : > { %p2256_p3 = por %p2255_p6, %p2254_p4 }
 0x92d   : > { %p2252_p10 = pneg %p2251_p0 }
 0x92f   : > { %p2257_p7 = pnand %p2256_p3, %p2252_p10 }
 0x931   : > { %2260 = shalt.err (!%p2257_p7)
}
 0x932   : > { %s2376_s10 = smov 128   ;;  %s1726_s13 = sshll.u32 %s2604_s5, 3 }
 0x933   : > { %1937 = dma.vmem_to_hbm [thread:$0]  (%p2574_p2), %s2772_s17, 512, %s2770_s24, %s1501_s20, %s2376_s10, %s2376_s10, %s2372_s16  }
 0x934   : > { %s2896_s7 = sld [smem:[#allocation29_spill]]  ;;  %s1769_s4 = sshll.u32 %s2349_s28, 7 }
 0x935   : > { %s2897_s14 = sld [smem:[#allocation30_spill]]  ;;  %s560_s8 = scalar_lea.vmem [#allocation14], %s1726_s13 }
 0x936   : > { %s1515_s16 = sshll.u32 %s560_s8, 4  ;;  %s2898_s20 = sld [smem:[#allocation31_spill]]  ;;  %s1516_s16 = int_to_ptr.vmem [resolvable:$true] %s1515_s16 }
 0x937   : > { %s1496_s10 = scalar_lea.sflag [#allocation5], %s2604_s5  ;;  %s2261_s18 = scalar_lea.vmem %s1516_s16, 128 }
 0x938   : > { %p2262_p1 = scmp.ne.s32.totalorder %s1516_s16, %s2261_s18  ;;  %s2377_s21 = smov [#allocation14]  }
 0x93a   : > { %v1765_v52 = vld [vmem:[%s2896_s7] ss:$0 sm:$0xff]  ;;  %p2263_p5 = pnand %p2262_p1, %p2574_p2  ;;  %s2265_s7 = sshll.u32 %s2377_s21, 4  ;;  %s2266_s7 = int_to_ptr.vmem [resolvable:$false] %s2265_s7 }
 0x93b   : > { %v1766_v54 = vld [vmem:[%s2897_s14] ss:$0 sm:$0xff]  ;;  %s2267_s28 = scalar_lea.vmem %s2266_s7, 256  ;;  %p2268_p11 = scmp.lt.s32.totalorder %s1516_s16, %s2266_s7 }
 0x93c   : > { %s1513_s6 = scalar_lea.hbm %s2898_s20, %s1769_s4  ;;  %p2264_p9 = pneg %p2263_p5 }
 0x93d   : > { %p2269_p12 = scmp.lt.s32.totalorder %s2267_s28, %s2261_s18 }
 0x93f   : > { %p2270_p13 = por %p2269_p12, %p2268_p11 }
 0x941   : > { %p2271_p0 = pnand %p2270_p13, %p2264_p9 }
 0x9af   : > { %v1475_v48 = vpop.xlane.xlu0 %1474 }
 0x9b0   : > { %v1476_v49 = vmul.f32 0.03125, %v1475_v48 }
 0x9b2   : > { %v1477_v50 = vadd.f32 1e-06, %v1476_v49 }
 0x9b4   : > { %2075 = vrsqrt.f32 %v1477_v50 }
 0x9c1   : > { %v2076_v51 = vpop.eup %2075 }
 0x9c2   : > { %v1479_v53 = vmul.f32 %v2076_v51, %v1471_v45 }
 0x9c4   : > { %v1486_v55 = vmul.f32 %v1765_v52, %v1479_v53 }
 0x9c6   : > { %v1493_v56 = vadd.f32 %v1766_v54, %v1486_v55 }
 0x9c8   : > { %1494 = vst.msk [vmem:[%s560_s8] sm:$0xff] %vm595_vm1, %v1493_v56 }
 0x9c9   : > { %2274 = shalt.err (!%p2271_p0)
}
 0x9ca   : > { %s2275_s13 = scalar_lea.hbm %s1513_s6, 128  ;;  %s2279_s19 = scalar_lea.hbm %s2898_s20, 256 }
 0x9cb   : > { %p2276_p10 = scmp.ne.s32.totalorder %s1513_s6, %s2275_s13  ;;  %p2280_p3 = scmp.lt.s32.totalorder %s1513_s6, %s2898_s20 }
 0x9cc   : > { %p2281_p7 = scmp.lt.s32.totalorder %s2279_s19, %s2275_s13 }
 0x9cd   : > { %p2277_p4 = pnand %p2276_p10, %p2574_p2 }
 0x9ce   : > { %p2282_p1 = por %p2281_p7, %p2280_p3 }
 0x9cf   : > { %p2278_p6 = pneg %p2277_p4 }
 0x9d1   : > { %p2283_p5 = pnand %p2282_p1, %p2278_p6 }
 0x9d3   : > { %2286 = shalt.err (!%p2283_p5)
}
 0x9d4   : > { %1936 = dma.vmem_to_hbm [thread:$0]  (%p2574_p2), %s1516_s16, 128, %s1513_s6, %s1496_s10  }
 0x9d5 PF: > { %s1544_s8 = sand.u32 1, %s2337_s25   ;;  %p2899_p9 = scmp.ge.s32.totalorder %s2357_s30, 2 }
 0x9d6   : > { %s1545_s17 = scalar_lea.sflag [#allocation5], %s1544_s8 }
 0x9d7   : > { %p1961_p11 = pnand %p2899_p9, %p2582_p8 }
 0x9d9   : > { %p1962_p12 = pneg %p1961_p11 }
 0x9db   : > { %2328 = dma.done.wait (%p1962_p12), %s1545_s17, 128  }
 0x9dc   : > { %2330 = vsyncadd (%p1962_p12), %s1545_s17, 4294967168  ;;  %s1554_s24 = scalar_lea.sflag [#allocation16], %s1544_s8 }
 0x9dd   : > { %2332 = dma.done.wait (%p1962_p12), %s1554_s24, 512  }
 0x9de   : > { %2334 = vsyncadd (%p1962_p12), %s1554_s24, 4294966784  ;;  %s36_s30 = sadd.s32 1, %s2357_s30   ;;  %s2900_s12 = sld [smem:[#allocation23_spill]] }
 0x9df   : > { %p33_p13 = scmp.ge.s32.totalorder %s36_s30, 4   ;;  %s2901_s25 = smov %s2341_s26 }
 0x9e0   : > { %s2902_s26 = smov %s2345_s27  ;;  %s2903_s27 = smov %s2580_s11 }
 0x9e1   : > { %s2904_s28 = smov %s2353_s29  ;;  %35 = sbr.rel (!%p33_p13) target bundleno = 21 (0x15), region = 157 }
 0x9e4   : > { %s2905_s29 = smov %s2900_s12 }
 0x9e6   :  { %1559 = vsyncpa [#allocation4], 1 }
 0x9e7   :  { %1561 = vsyncpa [#allocation4 + $0x1], 1 }
 0x9e8   :  { %1562 = vsyncpa [#allocation7], 1 }
 0x9e9   :  { %1563 = vsyncpa [#allocation10], 1 }
 0x9ea   :  { %1564 = vsyncpa [#allocation13], 1 }
 0x9eb   :  { %1565 = vsyncpa [#allocation5], 1 }
 0x9ec   :  { %1567 = vsyncpa [#allocation5 + $0x1], 1 }
 0x9ed   :  { %1568 = vsyncpa [#allocation16], 1 }
 0x9ee   :  { %1570 = vsyncpa [#allocation16 + $0x1], 1 }

</bundles_post_ra>
